<compile_context>
chip_gen: v6e
topology: v6e:2x2x1
jax: 0.10.0
libtpu: 0.0.40
codegen_flags: <defaults>
</compile_context>

<pallas_src>
from functools import partial

import jax
import jax.numpy as jnp
from jax import lax
from jax.experimental import pallas as pl
from jax.experimental.pallas import tpu as pltpu


def _round_up(x, m):
    return (x + m - 1) // m * m


def _vmem_capacity_bytes(default=64 * 1024 * 1024):
    """Physical VMEM of the local TPU; conservative default if unknown."""
    try:
        return int(pltpu.get_tpu_info().vmem_capacity_bytes)
    except Exception:
        return default


def _wd_lstm_kernel(x_ref, w_ih_ref, w_hh_ref, b_ref, out_ref,
                    pre_sc, h_sc, c_sc, *, hidden_pad, chunk):
    """One grid step = `chunk` fused LSTM time steps for one batch tile.

    x_ref    : (chunk, b_tile, I_pad)   f32   raw inputs for this (batch,time) tile
    w_ih_ref : (I_pad, 4*H_pad)         bf16  per-gate-padded W_ih^T (resident)
    w_hh_ref : (H_pad, 4*H_pad)         bf16  dropout-masked W_hh^T (resident)
    b_ref    : (1, 4*H_pad)             f32   b_ih + b_hh, per-gate padded
    out_ref  : (chunk, b_tile, H_pad)   f32
    pre_sc   : (chunk, b_tile, 4*H_pad) f32   chunk's input-projection gates
    h_sc/c_sc: (b_tile, H_pad)          f32   recurrent state (persists across
                                              time chunks of one batch tile)
    """
    Hp = hidden_pad
    _, bt, Ip = x_ref.shape

    # Re-initialize the recurrent state at the first time chunk of every
    # batch tile (time is the innermost / fastest grid axis).
    @pl.when(pl.program_id(1) == 0)
    def _():
        h_sc[...] = jnp.zeros_like(h_sc)
        c_sc[...] = jnp.zeros_like(c_sc)

    # Fused input projection for the whole chunk: one dense MXU matmul
    # (chunk*b_tile, I_pad) @ (I_pad, 4*H_pad), f32 accumulation; bias added
    # once per chunk (hoisted out of the serial recurrence).
    x_flat = x_ref[...].astype(jnp.bfloat16).reshape(chunk * bt, Ip)
    pre = jnp.dot(x_flat, w_ih_ref[...], preferred_element_type=jnp.float32)
    pre_sc[...] = pre.reshape(chunk, bt, 4 * Hp) + b_ref[...]

    w_hh = w_hh_ref[...]                                  # (H_pad, 4*H_pad) bf16

    def step(s, carry):
        h_prev, c_prev = carry                            # f32 (b_tile, H_pad)
        # gates = pre[t] + h_{t-1} @ W_hh  (bf16 MXU, f32 accumulation)
        gates = pre_sc[s] + jnp.dot(h_prev.astype(jnp.bfloat16), w_hh,
                                    preferred_element_type=jnp.float32)
        # TODO(synk): on v6e/v7x the sigmoid/tanh could take bf16 inputs (bf16
        # EUP path) to roughly double transcendental throughput; kept f32 so
        # numerics are identical on v5e (no bf16 VPU/EUP) as well.
        i_g = jax.nn.sigmoid(gates[:, 0 * Hp:1 * Hp])
        f_g = jax.nn.sigmoid(gates[:, 1 * Hp:2 * Hp])
        g_g = jnp.tanh(gates[:, 2 * Hp:3 * Hp])
        c_new = f_g * c_prev + i_g * g_g
        o_g = jax.nn.sigmoid(gates[:, 3 * Hp:4 * Hp])
        h_new = o_g * jnp.tanh(c_new)
        out_ref[s] = h_new.astype(out_ref.dtype)
        return h_new, c_new

    h, c = lax.fori_loop(0, chunk, step, (h_sc[...], c_sc[...]), unroll=True)
    h_sc[...] = h
    c_sc[...] = c


def weight_drop_lstm(x, w_ih, w_hh_raw, b_ih, b_hh, dropout_mask,
                     *, time_chunk=16, batch_tile=128):
    """Forward of WeightDrop(nn.LSTM(I, H), weights=('weight_hh_l0',), dropout=p).

    x:            (T, B, I) float32
    w_ih:         (4H, I)
    w_hh_raw:     (4H, H)   -- the `weight_hh_l0_raw` parameter
    b_ih, b_hh:   (4H,)
    dropout_mask: (4H, H)   -- Bernoulli/(1-p) mask (ones if p==0 or eval mode)
    returns:      (T, B, H) hidden states for all time steps
    """
    T, B, I = x.shape
    four_h, H = w_hh_raw.shape
    assert four_h == 4 * H and w_ih.shape == (4 * H, I)
    f32 = jnp.float32

    # ---- WeightDrop._setweights(): dropout applied to the raw hh weight, once
    w_hh = w_hh_raw.astype(f32) * dropout_mask.astype(f32)             # (4H, H)

    # ---- TPU-friendly tile sizes --------------------------------------------
    H_pad = _round_up(H, 128)            # lane-dense output, 128-aligned gates
    I_pad = _round_up(I, 128)
    b_tile = max(8, _round_up(min(batch_tile, _round_up(B, 8)), 8))
    chunk = max(1, min(time_chunk, T))

    # ---- per-generation VMEM budget; shrink tiles until they fit ------------
    budget = int(0.8 * _vmem_capacity_bytes())     # leave compiler headroom

    def vmem_need(ch, bt):
        w_b = (I_pad + H_pad) * 4 * H_pad * 2      # bf16 weights, 1 buffer
        bias_b = 2 * 4 * H_pad * 4                 # bias, double-buffered
        x_b = 2 * ch * bt * I_pad * 4              # x block, double-buffered
        out_b = 2 * ch * bt * H_pad * 4            # out block, double-buffered
        pre_b = ch * bt * 4 * H_pad * 4            # pre-gates scratch
        st_b = 2 * bt * H_pad * 4                  # h/c state
        return w_b + bias_b + x_b + out_b + pre_b + st_b

    while vmem_need(chunk, b_tile) > budget and chunk > 1:
        chunk = max(1, chunk // 2)
    while vmem_need(chunk, b_tile) > budget and b_tile > 8:
        b_tile = max(8, _round_up(b_tile // 2, 8))

    B_pad = _round_up(B, b_tile)
    # v7x: keep >= 2 batch tiles so the "parallel" batch axis can shard across
    # both TensorCores; never drop a tile below 128 rows (MXU-native M).
    if B_pad == b_tile and b_tile >= 256:
        b_tile //= 2
        B_pad = _round_up(B, b_tile)
    T_pad = _round_up(T, chunk)

    need = vmem_need(chunk, b_tile)
    vmem_limit = int(min(_vmem_capacity_bytes(),
                         max(budget, int(1.2 * need), 16 * 1024 * 1024)))

    # ---- pad weights/bias per gate (the big activation is never re-padded) --
    # W_ih^T, per-gate padded, bf16, resident in VMEM.
    w_ih_t = w_ih.astype(f32).T.reshape(I, 4, H)
    w_ih_t = jnp.pad(w_ih_t, ((0, I_pad - I), (0, 0), (0, H_pad - H)))
    w_ih_p = w_ih_t.reshape(I_pad, 4 * H_pad).astype(jnp.bfloat16)

    # Dropout-masked W_hh^T, per-gate padded, bf16, resident in VMEM.
    w_hh_t = w_hh.T.reshape(H, 4, H)
    w_hh_t = jnp.pad(w_hh_t, ((0, H_pad - H), (0, 0), (0, H_pad - H)))
    w_hh_p = w_hh_t.reshape(H_pad, 4 * H_pad).astype(jnp.bfloat16)

    # Combined bias, per-gate padded.
    b4 = (b_ih + b_hh).astype(f32).reshape(4, H)
    b_p = jnp.pad(b4, ((0, 0), (0, H_pad - H))).reshape(1, 4 * H_pad)

    # x padded once (zero padding rows/lanes contribute nothing).
    x_p = jnp.pad(x.astype(f32),
                  ((0, T_pad - T), (0, B_pad - B), (0, I_pad - I)))

    num_b_tiles = B_pad // b_tile
    num_t_chunks = T_pad // chunk
    kernel = partial(_wd_lstm_kernel, hidden_pad=H_pad, chunk=chunk)

    def build(single_buffer_weights):
        def const_spec(shape):
            if single_buffer_weights:
                # Loop-invariant weight: one resident copy, no double buffer.
                return pl.BlockSpec(shape, lambda bi, ti: (0, 0),
                                    pipeline_mode=pl.Buffered(1))
            return pl.BlockSpec(shape, lambda bi, ti: (0, 0))

        return pl.pallas_call(
            kernel,
            out_shape=jax.ShapeDtypeStruct((T_pad, B_pad, H_pad), f32),
            grid_spec=pltpu.PrefetchScalarGridSpec(
                num_scalar_prefetch=0,
                grid=(num_b_tiles, num_t_chunks),
                in_specs=[
                    # raw inputs for this (batch, time) tile
                    pl.BlockSpec((chunk, b_tile, I_pad),
                                 lambda bi, ti: (ti, bi, 0)),
                    # resident, per-gate-padded bf16 W_ih^T
                    const_spec((I_pad, 4 * H_pad)),
                    # resident, dropout-masked bf16 W_hh^T
                    const_spec((H_pad, 4 * H_pad)),
                    # combined bias (tiny)
                    pl.BlockSpec((1, 4 * H_pad), lambda bi, ti: (0, 0)),
                ],
                out_specs=pl.BlockSpec((chunk, b_tile, H_pad),
                                       lambda bi, ti: (ti, bi, 0)),
                scratch_shapes=[
                    pltpu.VMEM((chunk, b_tile, 4 * H_pad), f32),  # pre gates
                    pltpu.VMEM((b_tile, H_pad), f32),             # h state
                    pltpu.VMEM((b_tile, H_pad), f32),             # c state
                ],
            ),
            compiler_params=pltpu.CompilerParams(
                # batch tiles are independent (megacore-parallel on v7x);
                # the time recurrence must stay sequential ("arbitrary").
                dimension_semantics=("parallel", "arbitrary"),
                vmem_limit_bytes=vmem_limit,
            ),
        )

    try:
        out_p = build(True)(x_p, w_ih_p, w_hh_p, b_p)
    except Exception:
        # Fallback if this jax build rejects Buffered(1): double-buffer weights.
        out_p = build(False)(x_p, w_ih_p, w_hh_p, b_p)

    return out_p[:T, :B, :H]


def _reference_lstm(x, w_ih, w_hh_raw, b_ih, b_hh, dropout_mask):
    """Pure-JAX reference with the same numerics as the kernel
    (bf16-operand / f32-accumulate matmuls, f32 elementwise cell math)."""
    T, B, I = x.shape
    H = w_hh_raw.shape[1]
    w_hh_bf = (w_hh_raw * dropout_mask).T.astype(jnp.bfloat16)   # (H, 4H)
    w_ih_bf = w_ih.T.astype(jnp.bfloat16)                        # (I, 4H)
    b = (b_ih + b_hh).astype(jnp.float32)
    pre = (jnp.dot(x.reshape(T * B, I).astype(jnp.bfloat16), w_ih_bf,
                   preferred_element_type=jnp.float32)
           + b).reshape(T, B, 4 * H)

    def step(carry, pre_t):
        h, c = carry
        gates = pre_t + jnp.dot(h.astype(jnp.bfloat16), w_hh_bf,
                                preferred_element_type=jnp.float32)
        i_g = jax.nn.sigmoid(gates[:, 0 * H:1 * H])
        f_g = jax.nn.sigmoid(gates[:, 1 * H:2 * H])
        g_g = jnp.tanh(gates[:, 2 * H:3 * H])
        o_g = jax.nn.sigmoid(gates[:, 3 * H:4 * H])
        c_new = f_g * c + i_g * g_g
        h_new = o_g * jnp.tanh(c_new)
        return (h_new, c_new), h_new

    init = (jnp.zeros((B, H), jnp.float32), jnp.zeros((B, H), jnp.float32))
    _, hs = jax.lax.scan(step, init, pre)
    return hs


if __name__ == "__main__":
    key = jax.random.PRNGKey(0)
    T, B, I, H = 8, 4, 32, 32
    dropout_p = 0.5   # WeightDrop(dropout=0.5), training=True, variational=False

    k1, k2, k3, k4, k5, k6 = jax.random.split(key, 6)
    bound = 1.0 / float(jnp.sqrt(H))
    w_ih = jax.random.uniform(k1, (4 * H, I), jnp.float32, -bound, bound)
    w_hh_raw = jax.random.uniform(k2, (4 * H, H), jnp.float32, -bound, bound)
    b_ih = jax.random.uniform(k3, (4 * H,), jnp.float32, -bound, bound)
    b_hh = jax.random.uniform(k4, (4 * H,), jnp.float32, -bound, bound)
    x = jax.random.normal(k5, (T, B, I), jnp.float32)

    # Non-variational weight dropout (F.dropout on the raw weight, training=True),
    # realized as a deterministic precomputed mask with inverted-dropout scaling.
    # TODO(synk): variational=True would use a (4H, 1) row mask broadcast over
    # columns; pass it broadcast to (4H, H) here to get that behavior.
    keep = jax.random.bernoulli(k6, 1.0 - dropout_p, (4 * H, H))
    mask = keep.astype(jnp.float32) / (1.0 - dropout_p)

    # time_chunk=4 -> 2 time chunks: exercises h/c scratch carry across grid steps.
    out = weight_drop_lstm(x, w_ih, w_hh_raw, b_ih, b_hh, mask, time_chunk=4)
    out = jax.block_until_ready(out)

    ref = _reference_lstm(x, w_ih, w_hh_raw, b_ih, b_hh, mask)
    assert out.shape == (T, B, H)
    assert jnp.allclose(out, ref, atol=3e-3, rtol=3e-3), "mismatch vs JAX reference"

    print("KERNEL_OK")
</pallas_src>

<mosaic_0001>
module attributes {stable_mosaic.version = 11 : i64} {
  func.func @_wd_lstm_kernel(%arg0: i32, %arg1: i32, %arg2: memref<4x8x128xf32, #tpu.memory_space<vmem>>, %arg3: memref<128x512xbf16, #tpu.memory_space<vmem>>, %arg4: memref<128x512xbf16, #tpu.memory_space<vmem>>, %arg5: memref<1x512xf32, #tpu.memory_space<vmem>>, %arg6: memref<4x8x128xf32, #tpu.memory_space<vmem>>, %arg7: memref<4x8x512xf32, #tpu.memory_space<vmem>>, %arg8: memref<8x128xf32, #tpu.memory_space<vmem>>, %arg9: memref<8x128xf32, #tpu.memory_space<vmem>>) attributes {dimension_semantics = [#tpu.dimension_semantics<parallel>, #tpu.dimension_semantics<arbitrary>], iteration_bounds = array<i64: 1, 2>, scalar_prefetch = 0 : i64, scratch_operands = 3 : i64, tpu.core_type = #tpu.core_type<tc>, window_params = [{transform_indices = @transform_0, window_bounds = array<i64: 4, 8, 128>}, {pipeline_mode = #tpu.pipeline_mode<synchronous>, transform_indices = @transform_1, window_bounds = array<i64: 128, 512>}, {pipeline_mode = #tpu.pipeline_mode<synchronous>, transform_indices = @transform_2, window_bounds = array<i64: 128, 512>}, {pipeline_mode = #tpu.pipeline_mode<synchronous>, transform_indices = @transform_3, window_bounds = array<i64: 1, 512>}, {transform_indices = @transform_4, window_bounds = array<i64: 4, 8, 128>}]} {
    %c0_i32 = arith.constant 0 : i32
    %0 = arith.cmpi eq, %arg1, %c0_i32 : i32
    %1 = arith.extui %0 : i1 to i32
    %c0_i32_0 = arith.constant 0 : i32
    %2 = arith.cmpi ne, %1, %c0_i32_0 : i32
    scf.if %2 {
      %cst_53 = arith.constant 0.000000e+00 : f32
      %159 = vector.broadcast %cst_53 : f32 to vector<8x128xf32>
      %c0_54 = arith.constant 0 : index
      %c0_55 = arith.constant 0 : index
      %160 = vector.load %arg8[%c0_54, %c0_55] : memref<8x128xf32, #tpu.memory_space<vmem>>, vector<8x128xf32>
      tpu.vector_store %arg8[%c0_54, %c0_55], %159 {strides = array<i32>} : memref<8x128xf32, #tpu.memory_space<vmem>>, vector<8x128xf32>,
      %cst_56 = arith.constant 0.000000e+00 : f32
      %161 = vector.broadcast %cst_56 : f32 to vector<8x128xf32>
      %c0_57 = arith.constant 0 : index
      %c0_58 = arith.constant 0 : index
      %162 = vector.load %arg9[%c0_57, %c0_58] : memref<8x128xf32, #tpu.memory_space<vmem>>, vector<8x128xf32>
      tpu.vector_store %arg9[%c0_57, %c0_58], %161 {strides = array<i32>} : memref<8x128xf32, #tpu.memory_space<vmem>>, vector<8x128xf32>,
    } else {
    }
    %c0 = arith.constant 0 : index
    %c0_1 = arith.constant 0 : index
    %c0_2 = arith.constant 0 : index
    %3 = vector.load %arg2[%c0, %c0_1, %c0_2] : memref<4x8x128xf32, #tpu.memory_space<vmem>>, vector<4x8x128xf32>
    %4 = arith.truncf %3 : vector<4x8x128xf32> to vector<4x8x128xbf16>
    %5 = vector.shape_cast %4 : vector<4x8x128xbf16> to vector<32x128xbf16>
    %c0_3 = arith.constant 0 : index
    %c0_4 = arith.constant 0 : index
    %6 = vector.load %arg3[%c0_3, %c0_4] : memref<128x512xbf16, #tpu.memory_space<vmem>>, vector<128x512xbf16>
    %cst = arith.constant dense<0.000000e+00> : vector<32x512xf32>
    %7 = tpu.matmul %5, %6, %cst {dimension_numbers = #tpu.dot_dimension_numbers<[1], [0], [0], [1], [0, 0, 1, 1], [], []>} : vector<32x128xbf16>, vector<128x512xbf16>, vector<32x512xf32> -> vector<32x512xf32>
    %8 = vector.shape_cast %7 : vector<32x512xf32> to vector<4x8x512xf32>
    %c0_5 = arith.constant 0 : index
    %c0_6 = arith.constant 0 : index
    %9 = vector.load %arg5[%c0_5, %c0_6] : memref<1x512xf32, #tpu.memory_space<vmem>>, vector<1x512xf32>
    %10 = vector.shape_cast %9 : vector<1x512xf32> to vector<1x1x512xf32>
    %11 = vector.broadcast %10 : vector<1x1x512xf32> to vector<4x8x512xf32>
    %12 = arith.addf %8, %11 : vector<4x8x512xf32>
    %c0_7 = arith.constant 0 : index
    %c0_8 = arith.constant 0 : index
    %c0_9 = arith.constant 0 : index
    %13 = vector.load %arg7[%c0_7, %c0_8, %c0_9] : memref<4x8x512xf32, #tpu.memory_space<vmem>>, vector<4x8x512xf32>
    tpu.vector_store %arg7[%c0_7, %c0_8, %c0_9], %12 {strides = array<i32>} : memref<4x8x512xf32, #tpu.memory_space<vmem>>, vector<4x8x512xf32>,
    %c0_10 = arith.constant 0 : index
    %c0_11 = arith.constant 0 : index
    %14 = vector.load %arg4[%c0_10, %c0_11] : memref<128x512xbf16, #tpu.memory_space<vmem>>, vector<128x512xbf16>
    %c0_12 = arith.constant 0 : index
    %c0_13 = arith.constant 0 : index
    %15 = vector.load %arg8[%c0_12, %c0_13] : memref<8x128xf32, #tpu.memory_space<vmem>>, vector<8x128xf32>
    %c0_14 = arith.constant 0 : index
    %c0_15 = arith.constant 0 : index
    %16 = vector.load %arg9[%c0_14, %c0_15] : memref<8x128xf32, #tpu.memory_space<vmem>>, vector<8x128xf32>
    %c0_i32_16 = arith.constant 0 : i32
    %17 = arith.index_cast %c0_i32_16 : i32 to index
    %c0_17 = arith.constant 0 : index
    %c0_18 = arith.constant 0 : index
    %18 = vector.load %arg7[%17, %c0_17, %c0_18] : memref<4x8x512xf32, #tpu.memory_space<vmem>>, vector<1x8x512xf32>
    %19 = vector.shape_cast %18 : vector<1x8x512xf32> to vector<8x512xf32>
    %20 = arith.truncf %15 : vector<8x128xf32> to vector<8x128xbf16>
    %cst_19 = arith.constant dense<0.000000e+00> : vector<8x512xf32>
    %21 = tpu.matmul %20, %14, %cst_19 {dimension_numbers = #tpu.dot_dimension_numbers<[1], [0], [0], [1], [0, 0, 1, 1], [], []>} : vector<8x128xbf16>, vector<128x512xbf16>, vector<8x512xf32> -> vector<8x512xf32>
    %22 = arith.addf %19, %21 : vector<8x512xf32>
    %23 = vector.extract_strided_slice %22 {offsets = [0, 0], sizes = [8, 128], strides = [1, 1]} : vector<8x512xf32> to vector<8x128xf32>
    %24 = arith.negf %23 : vector<8x128xf32>
    %25 = math.exp %24 : vector<8x128xf32>
    %cst_20 = arith.constant 1.000000e+00 : f32
    %26 = vector.broadcast %cst_20 : f32 to vector<8x128xf32>
    %27 = arith.addf %26, %25 : vector<8x128xf32>
    %28 = arith.divf %26, %27 : vector<8x128xf32>
    %29 = vector.extract_strided_slice %22 {offsets = [0, 128], sizes = [8, 128], strides = [1, 1]} : vector<8x512xf32> to vector<8x128xf32>
    %30 = arith.negf %29 : vector<8x128xf32>
    %31 = math.exp %30 : vector<8x128xf32>
    %cst_21 = arith.constant 1.000000e+00 : f32
    %32 = vector.broadcast %cst_21 : f32 to vector<8x128xf32>
    %33 = arith.addf %32, %31 : vector<8x128xf32>
    %34 = arith.divf %32, %33 : vector<8x128xf32>
    %35 = vector.extract_strided_slice %22 {offsets = [0, 256], sizes = [8, 128], strides = [1, 1]} : vector<8x512xf32> to vector<8x128xf32>
    %36 = math.tanh %35 : vector<8x128xf32>
    %37 = arith.mulf %34, %16 : vector<8x128xf32>
    %38 = arith.mulf %28, %36 : vector<8x128xf32>
    %39 = arith.addf %37, %38 : vector<8x128xf32>
    %40 = vector.extract_strided_slice %22 {offsets = [0, 384], sizes = [8, 128], strides = [1, 1]} : vector<8x512xf32> to vector<8x128xf32>
    %41 = arith.negf %40 : vector<8x128xf32>
    %42 = math.exp %41 : vector<8x128xf32>
    %cst_22 = arith.constant 1.000000e+00 : f32
    %43 = vector.broadcast %cst_22 : f32 to vector<8x128xf32>
    %44 = arith.addf %43, %42 : vector<8x128xf32>
    %45 = arith.divf %43, %44 : vector<8x128xf32>
    %46 = math.tanh %39 : vector<8x128xf32>
    %47 = arith.mulf %45, %46 : vector<8x128xf32>
    %48 = arith.index_cast %c0_i32_16 : i32 to index
    %c0_23 = arith.constant 0 : index
    %c0_24 = arith.constant 0 : index
    %49 = vector.load %arg6[%48, %c0_23, %c0_24] : memref<4x8x128xf32, #tpu.memory_space<vmem>>, vector<1x8x128xf32>
    %50 = vector.shape_cast %49 : vector<1x8x128xf32> to vector<8x128xf32>
    %51 = vector.shape_cast %47 : vector<8x128xf32> to vector<1x8x128xf32>
    tpu.vector_store %arg6[%48, %c0_23, %c0_24], %51 {strides = array<i32>} : memref<4x8x128xf32, #tpu.memory_space<vmem>>, vector<1x8x128xf32>,
    %c1_i32 = arith.constant 1 : i32
    %52 = arith.index_cast %c1_i32 : i32 to index
    %c0_25 = arith.constant 0 : index
    %c0_26 = arith.constant 0 : index
    %53 = vector.load %arg7[%52, %c0_25, %c0_26] : memref<4x8x512xf32, #tpu.memory_space<vmem>>, vector<1x8x512xf32>
    %54 = vector.shape_cast %53 : vector<1x8x512xf32> to vector<8x512xf32>
    %55 = arith.truncf %47 : vector<8x128xf32> to vector<8x128xbf16>
    %cst_27 = arith.constant dense<0.000000e+00> : vector<8x512xf32>
    %56 = tpu.matmul %55, %14, %cst_27 {dimension_numbers = #tpu.dot_dimension_numbers<[1], [0], [0], [1], [0, 0, 1, 1], [], []>} : vector<8x128xbf16>, vector<128x512xbf16>, vector<8x512xf32> -> vector<8x512xf32>
    %57 = arith.addf %54, %56 : vector<8x512xf32>
    %58 = vector.extract_strided_slice %57 {offsets = [0, 0], sizes = [8, 128], strides = [1, 1]} : vector<8x512xf32> to vector<8x128xf32>
    %59 = arith.negf %58 : vector<8x128xf32>
    %60 = math.exp %59 : vector<8x128xf32>
    %cst_28 = arith.constant 1.000000e+00 : f32
    %61 = vector.broadcast %cst_28 : f32 to vector<8x128xf32>
    %62 = arith.addf %61, %60 : vector<8x128xf32>
    %63 = arith.divf %61, %62 : vector<8x128xf32>
    %64 = vector.extract_strided_slice %57 {offsets = [0, 128], sizes = [8, 128], strides = [1, 1]} : vector<8x512xf32> to vector<8x128xf32>
    %65 = arith.negf %64 : vector<8x128xf32>
    %66 = math.exp %65 : vector<8x128xf32>
    %cst_29 = arith.constant 1.000000e+00 : f32
    %67 = vector.broadcast %cst_29 : f32 to vector<8x128xf32>
    %68 = arith.addf %67, %66 : vector<8x128xf32>
    %69 = arith.divf %67, %68 : vector<8x128xf32>
    %70 = vector.extract_strided_slice %57 {offsets = [0, 256], sizes = [8, 128], strides = [1, 1]} : vector<8x512xf32> to vector<8x128xf32>
    %71 = math.tanh %70 : vector<8x128xf32>
    %72 = arith.mulf %69, %39 : vector<8x128xf32>
    %73 = arith.mulf %63, %71 : vector<8x128xf32>
    %74 = arith.addf %72, %73 : vector<8x128xf32>
    %75 = vector.extract_strided_slice %57 {offsets = [0, 384], sizes = [8, 128], strides = [1, 1]} : vector<8x512xf32> to vector<8x128xf32>
    %76 = arith.negf %75 : vector<8x128xf32>
    %77 = math.exp %76 : vector<8x128xf32>
    %cst_30 = arith.constant 1.000000e+00 : f32
    %78 = vector.broadcast %cst_30 : f32 to vector<8x128xf32>
    %79 = arith.addf %78, %77 : vector<8x128xf32>
    %80 = arith.divf %78, %79 : vector<8x128xf32>
    %81 = math.tanh %74 : vector<8x128xf32>
    %82 = arith.mulf %80, %81 : vector<8x128xf32>
    %83 = arith.index_cast %c1_i32 : i32 to index
    %c0_31 = arith.constant 0 : index
    %c0_32 = arith.constant 0 : index
    %84 = vector.load %arg6[%83, %c0_31, %c0_32] : memref<4x8x128xf32, #tpu.memory_space<vmem>>, vector<1x8x128xf32>
    %85 = vector.shape_cast %84 : vector<1x8x128xf32> to vector<8x128xf32>
    %86 = vector.shape_cast %82 : vector<8x128xf32> to vector<1x8x128xf32>
    tpu.vector_store %arg6[%83, %c0_31, %c0_32], %86 {strides = array<i32>} : memref<4x8x128xf32, #tpu.memory_space<vmem>>, vector<1x8x128xf32>,
    %c2_i32 = arith.constant 2 : i32
    %87 = arith.index_cast %c2_i32 : i32 to index
    %c0_33 = arith.constant 0 : index
    %c0_34 = arith.constant 0 : index
    %88 = vector.load %arg7[%87, %c0_33, %c0_34] : memref<4x8x512xf32, #tpu.memory_space<vmem>>, vector<1x8x512xf32>
    %89 = vector.shape_cast %88 : vector<1x8x512xf32> to vector<8x512xf32>
    %90 = arith.truncf %82 : vector<8x128xf32> to vector<8x128xbf16>
    %cst_35 = arith.constant dense<0.000000e+00> : vector<8x512xf32>
    %91 = tpu.matmul %90, %14, %cst_35 {dimension_numbers = #tpu.dot_dimension_numbers<[1], [0], [0], [1], [0, 0, 1, 1], [], []>} : vector<8x128xbf16>, vector<128x512xbf16>, vector<8x512xf32> -> vector<8x512xf32>
    %92 = arith.addf %89, %91 : vector<8x512xf32>
    %93 = vector.extract_strided_slice %92 {offsets = [0, 0], sizes = [8, 128], strides = [1, 1]} : vector<8x512xf32> to vector<8x128xf32>
    %94 = arith.negf %93 : vector<8x128xf32>
    %95 = math.exp %94 : vector<8x128xf32>
    %cst_36 = arith.constant 1.000000e+00 : f32
    %96 = vector.broadcast %cst_36 : f32 to vector<8x128xf32>
    %97 = arith.addf %96, %95 : vector<8x128xf32>
    %98 = arith.divf %96, %97 : vector<8x128xf32>
    %99 = vector.extract_strided_slice %92 {offsets = [0, 128], sizes = [8, 128], strides = [1, 1]} : vector<8x512xf32> to vector<8x128xf32>
    %100 = arith.negf %99 : vector<8x128xf32>
    %101 = math.exp %100 : vector<8x128xf32>
    %cst_37 = arith.constant 1.000000e+00 : f32
    %102 = vector.broadcast %cst_37 : f32 to vector<8x128xf32>
    %103 = arith.addf %102, %101 : vector<8x128xf32>
    %104 = arith.divf %102, %103 : vector<8x128xf32>
    %105 = vector.extract_strided_slice %92 {offsets = [0, 256], sizes = [8, 128], strides = [1, 1]} : vector<8x512xf32> to vector<8x128xf32>
    %106 = math.tanh %105 : vector<8x128xf32>
    %107 = arith.mulf %104, %74 : vector<8x128xf32>
    %108 = arith.mulf %98, %106 : vector<8x128xf32>
    %109 = arith.addf %107, %108 : vector<8x128xf32>
    %110 = vector.extract_strided_slice %92 {offsets = [0, 384], sizes = [8, 128], strides = [1, 1]} : vector<8x512xf32> to vector<8x128xf32>
    %111 = arith.negf %110 : vector<8x128xf32>
    %112 = math.exp %111 : vector<8x128xf32>
    %cst_38 = arith.constant 1.000000e+00 : f32
    %113 = vector.broadcast %cst_38 : f32 to vector<8x128xf32>
    %114 = arith.addf %113, %112 : vector<8x128xf32>
    %115 = arith.divf %113, %114 : vector<8x128xf32>
    %116 = math.tanh %109 : vector<8x128xf32>
    %117 = arith.mulf %115, %116 : vector<8x128xf32>
    %118 = arith.index_cast %c2_i32 : i32 to index
    %c0_39 = arith.constant 0 : index
    %c0_40 = arith.constant 0 : index
    %119 = vector.load %arg6[%118, %c0_39, %c0_40] : memref<4x8x128xf32, #tpu.memory_space<vmem>>, vector<1x8x128xf32>
    %120 = vector.shape_cast %119 : vector<1x8x128xf32> to vector<8x128xf32>
    %121 = vector.shape_cast %117 : vector<8x128xf32> to vector<1x8x128xf32>
    tpu.vector_store %arg6[%118, %c0_39, %c0_40], %121 {strides = array<i32>} : memref<4x8x128xf32, #tpu.memory_space<vmem>>, vector<1x8x128xf32>,
    %c3_i32 = arith.constant 3 : i32
    %122 = arith.index_cast %c3_i32 : i32 to index
    %c0_41 = arith.constant 0 : index
    %c0_42 = arith.constant 0 : index
    %123 = vector.load %arg7[%122, %c0_41, %c0_42] : memref<4x8x512xf32, #tpu.memory_space<vmem>>, vector<1x8x512xf32>
    %124 = vector.shape_cast %123 : vector<1x8x512xf32> to vector<8x512xf32>
    %125 = arith.truncf %117 : vector<8x128xf32> to vector<8x128xbf16>
    %cst_43 = arith.constant dense<0.000000e+00> : vector<8x512xf32>
    %126 = tpu.matmul %125, %14, %cst_43 {dimension_numbers = #tpu.dot_dimension_numbers<[1], [0], [0], [1], [0, 0, 1, 1], [], []>} : vector<8x128xbf16>, vector<128x512xbf16>, vector<8x512xf32> -> vector<8x512xf32>
    %127 = arith.addf %124, %126 : vector<8x512xf32>
    %128 = vector.extract_strided_slice %127 {offsets = [0, 0], sizes = [8, 128], strides = [1, 1]} : vector<8x512xf32> to vector<8x128xf32>
    %129 = arith.negf %128 : vector<8x128xf32>
    %130 = math.exp %129 : vector<8x128xf32>
    %cst_44 = arith.constant 1.000000e+00 : f32
    %131 = vector.broadcast %cst_44 : f32 to vector<8x128xf32>
    %132 = arith.addf %131, %130 : vector<8x128xf32>
    %133 = arith.divf %131, %132 : vector<8x128xf32>
    %134 = vector.extract_strided_slice %127 {offsets = [0, 128], sizes = [8, 128], strides = [1, 1]} : vector<8x512xf32> to vector<8x128xf32>
    %135 = arith.negf %134 : vector<8x128xf32>
    %136 = math.exp %135 : vector<8x128xf32>
    %cst_45 = arith.constant 1.000000e+00 : f32
    %137 = vector.broadcast %cst_45 : f32 to vector<8x128xf32>
    %138 = arith.addf %137, %136 : vector<8x128xf32>
    %139 = arith.divf %137, %138 : vector<8x128xf32>
    %140 = vector.extract_strided_slice %127 {offsets = [0, 256], sizes = [8, 128], strides = [1, 1]} : vector<8x512xf32> to vector<8x128xf32>
    %141 = math.tanh %140 : vector<8x128xf32>
    %142 = arith.mulf %139, %109 : vector<8x128xf32>
    %143 = arith.mulf %133, %141 : vector<8x128xf32>
    %144 = arith.addf %142, %143 : vector<8x128xf32>
    %145 = vector.extract_strided_slice %127 {offsets = [0, 384], sizes = [8, 128], strides = [1, 1]} : vector<8x512xf32> to vector<8x128xf32>
    %146 = arith.negf %145 : vector<8x128xf32>
    %147 = math.exp %146 : vector<8x128xf32>
    %cst_46 = arith.constant 1.000000e+00 : f32
    %148 = vector.broadcast %cst_46 : f32 to vector<8x128xf32>
    %149 = arith.addf %148, %147 : vector<8x128xf32>
    %150 = arith.divf %148, %149 : vector<8x128xf32>
    %151 = math.tanh %144 : vector<8x128xf32>
    %152 = arith.mulf %150, %151 : vector<8x128xf32>
    %153 = arith.index_cast %c3_i32 : i32 to index
    %c0_47 = arith.constant 0 : index
    %c0_48 = arith.constant 0 : index
    %154 = vector.load %arg6[%153, %c0_47, %c0_48] : memref<4x8x128xf32, #tpu.memory_space<vmem>>, vector<1x8x128xf32>
    %155 = vector.shape_cast %154 : vector<1x8x128xf32> to vector<8x128xf32>
    %156 = vector.shape_cast %152 : vector<8x128xf32> to vector<1x8x128xf32>
    tpu.vector_store %arg6[%153, %c0_47, %c0_48], %156 {strides = array<i32>} : memref<4x8x128xf32, #tpu.memory_space<vmem>>, vector<1x8x128xf32>,
    %c4_i32 = arith.constant 4 : i32
    %c0_49 = arith.constant 0 : index
    %c0_50 = arith.constant 0 : index
    %157 = vector.load %arg8[%c0_49, %c0_50] : memref<8x128xf32, #tpu.memory_space<vmem>>, vector<8x128xf32>
    tpu.vector_store %arg8[%c0_49, %c0_50], %152 {strides = array<i32>} : memref<8x128xf32, #tpu.memory_space<vmem>>, vector<8x128xf32>,
    %c0_51 = arith.constant 0 : index
    %c0_52 = arith.constant 0 : index
    %158 = vector.load %arg9[%c0_51, %c0_52] : memref<8x128xf32, #tpu.memory_space<vmem>>, vector<8x128xf32>
    tpu.vector_store %arg9[%c0_51, %c0_52], %144 {strides = array<i32>} : memref<8x128xf32, #tpu.memory_space<vmem>>, vector<8x128xf32>,
    return
  }
  func.func @transform_0(%arg0: i32, %arg1: i32) -> (i32, i32, i32) {
    %c0_i32 = arith.constant 0 : i32
    %c0_i32_0 = arith.constant 0 : i32
    return %arg1, %arg0, %c0_i32 : i32, i32, i32
  }
  func.func @transform_1(%arg0: i32, %arg1: i32) -> (i32, i32) {
    %c0_i32 = arith.constant 0 : i32
    %c0_i32_0 = arith.constant 0 : i32
    %c0_i32_1 = arith.constant 0 : i32
    return %c0_i32, %c0_i32_0 : i32, i32
  }
  func.func @transform_2(%arg0: i32, %arg1: i32) -> (i32, i32) {
    %c0_i32 = arith.constant 0 : i32
    %c0_i32_0 = arith.constant 0 : i32
    %c0_i32_1 = arith.constant 0 : i32
    return %c0_i32, %c0_i32_0 : i32, i32
  }
  func.func @transform_3(%arg0: i32, %arg1: i32) -> (i32, i32) {
    %c0_i32 = arith.constant 0 : i32
    %c0_i32_0 = arith.constant 0 : i32
    %c0_i32_1 = arith.constant 0 : i32
    return %c0_i32, %c0_i32_0 : i32, i32
  }
  func.func @transform_4(%arg0: i32, %arg1: i32) -> (i32, i32, i32) {
    %c0_i32 = arith.constant 0 : i32
    %c0_i32_0 = arith.constant 0 : i32
    return %arg1, %arg0, %c0_i32 : i32, i32, i32
  }
}

module attributes {stable_mosaic.version = 11 : i64} {
  func.func @_wd_lstm_kernel(%arg0: i32, %arg1: i32, %arg2: memref<4x8x128xf32, #tpu.memory_space<vmem>>, %arg3: memref<128x512xbf16, #tpu.memory_space<vmem>>, %arg4: memref<128x512xbf16, #tpu.memory_space<vmem>>, %arg5: memref<1x512xf32, #tpu.memory_space<vmem>>, %arg6: memref<4x8x128xf32, #tpu.memory_space<vmem>>, %arg7: memref<4x8x512xf32, #tpu.memory_space<vmem>>, %arg8: memref<8x128xf32, #tpu.memory_space<vmem>>, %arg9: memref<8x128xf32, #tpu.memory_space<vmem>>) attributes {dimension_semantics = [#tpu.dimension_semantics<parallel>, #tpu.dimension_semantics<arbitrary>], iteration_bounds = array<i64: 1, 2>, scalar_prefetch = 0 : i64, scratch_operands = 3 : i64, tpu.core_type = #tpu.core_type<tc>, window_params = [{transform_indices = @transform_0, window_bounds = array<i64: 4, 8, 128>}, {pipeline_mode = #tpu.pipeline_mode<synchronous>, transform_indices = @transform_1, window_bounds = array<i64: 128, 512>}, {pipeline_mode = #tpu.pipeline_mode<synchronous>, transform_indices = @transform_2, window_bounds = array<i64: 128, 512>}, {pipeline_mode = #tpu.pipeline_mode<synchronous>, transform_indices = @transform_3, window_bounds = array<i64: 1, 512>}, {transform_indices = @transform_4, window_bounds = array<i64: 4, 8, 128>}]} {
    %c0_i32 = arith.constant 0 : i32
    %0 = arith.cmpi eq, %arg1, %c0_i32 : i32
    %1 = arith.extui %0 : i1 to i32
    %c0_i32_0 = arith.constant 0 : i32
    %2 = arith.cmpi ne, %1, %c0_i32_0 : i32
    scf.if %2 {
      %cst_53 = arith.constant 0.000000e+00 : f32
      %159 = vector.broadcast %cst_53 : f32 to vector<8x128xf32>
      %c0_54 = arith.constant 0 : index
      %c0_55 = arith.constant 0 : index
      %160 = vector.load %arg8[%c0_54, %c0_55] : memref<8x128xf32, #tpu.memory_space<vmem>>, vector<8x128xf32>
      tpu.vector_store %arg8[%c0_54, %c0_55], %159 {strides = array<i32>} : memref<8x128xf32, #tpu.memory_space<vmem>>, vector<8x128xf32>,
      %cst_56 = arith.constant 0.000000e+00 : f32
      %161 = vector.broadcast %cst_56 : f32 to vector<8x128xf32>
      %c0_57 = arith.constant 0 : index
      %c0_58 = arith.constant 0 : index
      %162 = vector.load %arg9[%c0_57, %c0_58] : memref<8x128xf32, #tpu.memory_space<vmem>>, vector<8x128xf32>
      tpu.vector_store %arg9[%c0_57, %c0_58], %161 {strides = array<i32>} : memref<8x128xf32, #tpu.memory_space<vmem>>, vector<8x128xf32>,
    } else {
    }
    %c0 = arith.constant 0 : index
    %c0_1 = arith.constant 0 : index
    %c0_2 = arith.constant 0 : index
    %3 = vector.load %arg2[%c0, %c0_1, %c0_2] : memref<4x8x128xf32, #tpu.memory_space<vmem>>, vector<4x8x128xf32>
    %4 = arith.truncf %3 : vector<4x8x128xf32> to vector<4x8x128xbf16>
    %5 = vector.shape_cast %4 : vector<4x8x128xbf16> to vector<32x128xbf16>
    %c0_3 = arith.constant 0 : index
    %c0_4 = arith.constant 0 : index
    %6 = vector.load %arg3[%c0_3, %c0_4] : memref<128x512xbf16, #tpu.memory_space<vmem>>, vector<128x512xbf16>
    %cst = arith.constant dense<0.000000e+00> : vector<32x512xf32>
    %7 = tpu.matmul %5, %6, %cst {dimension_numbers = #tpu.dot_dimension_numbers<[1], [0], [0], [1], [0, 0, 1, 1], [], []>} : vector<32x128xbf16>, vector<128x512xbf16>, vector<32x512xf32> -> vector<32x512xf32>
    %8 = vector.shape_cast %7 : vector<32x512xf32> to vector<4x8x512xf32>
    %c0_5 = arith.constant 0 : index
    %c0_6 = arith.constant 0 : index
    %9 = vector.load %arg5[%c0_5, %c0_6] : memref<1x512xf32, #tpu.memory_space<vmem>>, vector<1x512xf32>
    %10 = vector.shape_cast %9 : vector<1x512xf32> to vector<1x1x512xf32>
    %11 = vector.broadcast %10 : vector<1x1x512xf32> to vector<4x8x512xf32>
    %12 = arith.addf %8, %11 : vector<4x8x512xf32>
    %c0_7 = arith.constant 0 : index
    %c0_8 = arith.constant 0 : index
    %c0_9 = arith.constant 0 : index
    %13 = vector.load %arg7[%c0_7, %c0_8, %c0_9] : memref<4x8x512xf32, #tpu.memory_space<vmem>>, vector<4x8x512xf32>
    tpu.vector_store %arg7[%c0_7, %c0_8, %c0_9], %12 {strides = array<i32>} : memref<4x8x512xf32, #tpu.memory_space<vmem>>, vector<4x8x512xf32>,
    %c0_10 = arith.constant 0 : index
    %c0_11 = arith.constant 0 : index
    %14 = vector.load %arg4[%c0_10, %c0_11] : memref<128x512xbf16, #tpu.memory_space<vmem>>, vector<128x512xbf16>
    %c0_12 = arith.constant 0 : index
    %c0_13 = arith.constant 0 : index
    %15 = vector.load %arg8[%c0_12, %c0_13] : memref<8x128xf32, #tpu.memory_space<vmem>>, vector<8x128xf32>
    %c0_14 = arith.constant 0 : index
    %c0_15 = arith.constant 0 : index
    %16 = vector.load %arg9[%c0_14, %c0_15] : memref<8x128xf32, #tpu.memory_space<vmem>>, vector<8x128xf32>
    %c0_i32_16 = arith.constant 0 : i32
    %17 = arith.index_cast %c0_i32_16 : i32 to index
    %c0_17 = arith.constant 0 : index
    %c0_18 = arith.constant 0 : index
    %18 = vector.load %arg7[%17, %c0_17, %c0_18] : memref<4x8x512xf32, #tpu.memory_space<vmem>>, vector<1x8x512xf32>
    %19 = vector.shape_cast %18 : vector<1x8x512xf32> to vector<8x512xf32>
    %20 = arith.truncf %15 : vector<8x128xf32> to vector<8x128xbf16>
    %cst_19 = arith.constant dense<0.000000e+00> : vector<8x512xf32>
    %21 = tpu.matmul %20, %14, %cst_19 {dimension_numbers = #tpu.dot_dimension_numbers<[1], [0], [0], [1], [0, 0, 1, 1], [], []>} : vector<8x128xbf16>, vector<128x512xbf16>, vector<8x512xf32> -> vector<8x512xf32>
    %22 = arith.addf %19, %21 : vector<8x512xf32>
    %23 = vector.extract_strided_slice %22 {offsets = [0, 0], sizes = [8, 128], strides = [1, 1]} : vector<8x512xf32> to vector<8x128xf32>
    %24 = arith.negf %23 : vector<8x128xf32>
    %25 = math.exp %24 : vector<8x128xf32>
    %cst_20 = arith.constant 1.000000e+00 : f32
    %26 = vector.broadcast %cst_20 : f32 to vector<8x128xf32>
    %27 = arith.addf %26, %25 : vector<8x128xf32>
    %28 = arith.divf %26, %27 : vector<8x128xf32>
    %29 = vector.extract_strided_slice %22 {offsets = [0, 128], sizes = [8, 128], strides = [1, 1]} : vector<8x512xf32> to vector<8x128xf32>
    %30 = arith.negf %29 : vector<8x128xf32>
    %31 = math.exp %30 : vector<8x128xf32>
    %cst_21 = arith.constant 1.000000e+00 : f32
    %32 = vector.broadcast %cst_21 : f32 to vector<8x128xf32>
    %33 = arith.addf %32, %31 : vector<8x128xf32>
    %34 = arith.divf %32, %33 : vector<8x128xf32>
    %35 = vector.extract_strided_slice %22 {offsets = [0, 256], sizes = [8, 128], strides = [1, 1]} : vector<8x512xf32> to vector<8x128xf32>
    %36 = math.tanh %35 : vector<8x128xf32>
    %37 = arith.mulf %34, %16 : vector<8x128xf32>
    %38 = arith.mulf %28, %36 : vector<8x128xf32>
    %39 = arith.addf %37, %38 : vector<8x128xf32>
    %40 = vector.extract_strided_slice %22 {offsets = [0, 384], sizes = [8, 128], strides = [1, 1]} : vector<8x512xf32> to vector<8x128xf32>
    %41 = arith.negf %40 : vector<8x128xf32>
    %42 = math.exp %41 : vector<8x128xf32>
    %cst_22 = arith.constant 1.000000e+00 : f32
    %43 = vector.broadcast %cst_22 : f32 to vector<8x128xf32>
    %44 = arith.addf %43, %42 : vector<8x128xf32>
    %45 = arith.divf %43, %44 : vector<8x128xf32>
    %46 = math.tanh %39 : vector<8x128xf32>
    %47 = arith.mulf %45, %46 : vector<8x128xf32>
    %48 = arith.index_cast %c0_i32_16 : i32 to index
    %c0_23 = arith.constant 0 : index
    %c0_24 = arith.constant 0 : index
    %49 = vector.load %arg6[%48, %c0_23, %c0_24] : memref<4x8x128xf32, #tpu.memory_space<vmem>>, vector<1x8x128xf32>
    %50 = vector.shape_cast %49 : vector<1x8x128xf32> to vector<8x128xf32>
    %51 = vector.shape_cast %47 : vector<8x128xf32> to vector<1x8x128xf32>
    tpu.vector_store %arg6[%48, %c0_23, %c0_24], %51 {strides = array<i32>} : memref<4x8x128xf32, #tpu.memory_space<vmem>>, vector<1x8x128xf32>,
    %c1_i32 = arith.constant 1 : i32
    %52 = arith.index_cast %c1_i32 : i32 to index
    %c0_25 = arith.constant 0 : index
    %c0_26 = arith.constant 0 : index
    %53 = vector.load %arg7[%52, %c0_25, %c0_26] : memref<4x8x512xf32, #tpu.memory_space<vmem>>, vector<1x8x512xf32>
    %54 = vector.shape_cast %53 : vector<1x8x512xf32> to vector<8x512xf32>
    %55 = arith.truncf %47 : vector<8x128xf32> to vector<8x128xbf16>
    %cst_27 = arith.constant dense<0.000000e+00> : vector<8x512xf32>
    %56 = tpu.matmul %55, %14, %cst_27 {dimension_numbers = #tpu.dot_dimension_numbers<[1], [0], [0], [1], [0, 0, 1, 1], [], []>} : vector<8x128xbf16>, vector<128x512xbf16>, vector<8x512xf32> -> vector<8x512xf32>
    %57 = arith.addf %54, %56 : vector<8x512xf32>
    %58 = vector.extract_strided_slice %57 {offsets = [0, 0], sizes = [8, 128], strides = [1, 1]} : vector<8x512xf32> to vector<8x128xf32>
    %59 = arith.negf %58 : vector<8x128xf32>
    %60 = math.exp %59 : vector<8x128xf32>
    %cst_28 = arith.constant 1.000000e+00 : f32
    %61 = vector.broadcast %cst_28 : f32 to vector<8x128xf32>
    %62 = arith.addf %61, %60 : vector<8x128xf32>
    %63 = arith.divf %61, %62 : vector<8x128xf32>
    %64 = vector.extract_strided_slice %57 {offsets = [0, 128], sizes = [8, 128], strides = [1, 1]} : vector<8x512xf32> to vector<8x128xf32>
    %65 = arith.negf %64 : vector<8x128xf32>
    %66 = math.exp %65 : vector<8x128xf32>
    %cst_29 = arith.constant 1.000000e+00 : f32
    %67 = vector.broadcast %cst_29 : f32 to vector<8x128xf32>
    %68 = arith.addf %67, %66 : vector<8x128xf32>
    %69 = arith.divf %67, %68 : vector<8x128xf32>
    %70 = vector.extract_strided_slice %57 {offsets = [0, 256], sizes = [8, 128], strides = [1, 1]} : vector<8x512xf32> to vector<8x128xf32>
    %71 = math.tanh %70 : vector<8x128xf32>
    %72 = arith.mulf %69, %39 : vector<8x128xf32>
    %73 = arith.mulf %63, %71 : vector<8x128xf32>
    %74 = arith.addf %72, %73 : vector<8x128xf32>
    %75 = vector.extract_strided_slice %57 {offsets = [0, 384], sizes = [8, 128], strides = [1, 1]} : vector<8x512xf32> to vector<8x128xf32>
    %76 = arith.negf %75 : vector<8x128xf32>
    %77 = math.exp %76 : vector<8x128xf32>
    %cst_30 = arith.constant 1.000000e+00 : f32
    %78 = vector.broadcast %cst_30 : f32 to vector<8x128xf32>
    %79 = arith.addf %78, %77 : vector<8x128xf32>
    %80 = arith.divf %78, %79 : vector<8x128xf32>
    %81 = math.tanh %74 : vector<8x128xf32>
    %82 = arith.mulf %80, %81 : vector<8x128xf32>
    %83 = arith.index_cast %c1_i32 : i32 to index
    %c0_31 = arith.constant 0 : index
    %c0_32 = arith.constant 0 : index
    %84 = vector.load %arg6[%83, %c0_31, %c0_32] : memref<4x8x128xf32, #tpu.memory_space<vmem>>, vector<1x8x128xf32>
    %85 = vector.shape_cast %84 : vector<1x8x128xf32> to vector<8x128xf32>
    %86 = vector.shape_cast %82 : vector<8x128xf32> to vector<1x8x128xf32>
    tpu.vector_store %arg6[%83, %c0_31, %c0_32], %86 {strides = array<i32>} : memref<4x8x128xf32, #tpu.memory_space<vmem>>, vector<1x8x128xf32>,
    %c2_i32 = arith.constant 2 : i32
    %87 = arith.index_cast %c2_i32 : i32 to index
    %c0_33 = arith.constant 0 : index
    %c0_34 = arith.constant 0 : index
    %88 = vector.load %arg7[%87, %c0_33, %c0_34] : memref<4x8x512xf32, #tpu.memory_space<vmem>>, vector<1x8x512xf32>
    %89 = vector.shape_cast %88 : vector<1x8x512xf32> to vector<8x512xf32>
    %90 = arith.truncf %82 : vector<8x128xf32> to vector<8x128xbf16>
    %cst_35 = arith.constant dense<0.000000e+00> : vector<8x512xf32>
    %91 = tpu.matmul %90, %14, %cst_35 {dimension_numbers = #tpu.dot_dimension_numbers<[1], [0], [0], [1], [0, 0, 1, 1], [], []>} : vector<8x128xbf16>, vector<128x512xbf16>, vector<8x512xf32> -> vector<8x512xf32>
    %92 = arith.addf %89, %91 : vector<8x512xf32>
    %93 = vector.extract_strided_slice %92 {offsets = [0, 0], sizes = [8, 128], strides = [1, 1]} : vector<8x512xf32> to vector<8x128xf32>
    %94 = arith.negf %93 : vector<8x128xf32>
    %95 = math.exp %94 : vector<8x128xf32>
    %cst_36 = arith.constant 1.000000e+00 : f32
    %96 = vector.broadcast %cst_36 : f32 to vector<8x128xf32>
    %97 = arith.addf %96, %95 : vector<8x128xf32>
    %98 = arith.divf %96, %97 : vector<8x128xf32>
    %99 = vector.extract_strided_slice %92 {offsets = [0, 128], sizes = [8, 128], strides = [1, 1]} : vector<8x512xf32> to vector<8x128xf32>
    %100 = arith.negf %99 : vector<8x128xf32>
    %101 = math.exp %100 : vector<8x128xf32>
    %cst_37 = arith.constant 1.000000e+00 : f32
    %102 = vector.broadcast %cst_37 : f32 to vector<8x128xf32>
    %103 = arith.addf %102, %101 : vector<8x128xf32>
    %104 = arith.divf %102, %103 : vector<8x128xf32>
    %105 = vector.extract_strided_slice %92 {offsets = [0, 256], sizes = [8, 128], strides = [1, 1]} : vector<8x512xf32> to vector<8x128xf32>
    %106 = math.tanh %105 : vector<8x128xf32>
    %107 = arith.mulf %104, %74 : vector<8x128xf32>
    %108 = arith.mulf %98, %106 : vector<8x128xf32>
    %109 = arith.addf %107, %108 : vector<8x128xf32>
    %110 = vector.extract_strided_slice %92 {offsets = [0, 384], sizes = [8, 128], strides = [1, 1]} : vector<8x512xf32> to vector<8x128xf32>
    %111 = arith.negf %110 : vector<8x128xf32>
    %112 = math.exp %111 : vector<8x128xf32>
    %cst_38 = arith.constant 1.000000e+00 : f32
    %113 = vector.broadcast %cst_38 : f32 to vector<8x128xf32>
    %114 = arith.addf %113, %112 : vector<8x128xf32>
    %115 = arith.divf %113, %114 : vector<8x128xf32>
    %116 = math.tanh %109 : vector<8x128xf32>
    %117 = arith.mulf %115, %116 : vector<8x128xf32>
    %118 = arith.index_cast %c2_i32 : i32 to index
    %c0_39 = arith.constant 0 : index
    %c0_40 = arith.constant 0 : index
    %119 = vector.load %arg6[%118, %c0_39, %c0_40] : memref<4x8x128xf32, #tpu.memory_space<vmem>>, vector<1x8x128xf32>
    %120 = vector.shape_cast %119 : vector<1x8x128xf32> to vector<8x128xf32>
    %121 = vector.shape_cast %117 : vector<8x128xf32> to vector<1x8x128xf32>
    tpu.vector_store %arg6[%118, %c0_39, %c0_40], %121 {strides = array<i32>} : memref<4x8x128xf32, #tpu.memory_space<vmem>>, vector<1x8x128xf32>,
    %c3_i32 = arith.constant 3 : i32
    %122 = arith.index_cast %c3_i32 : i32 to index
    %c0_41 = arith.constant 0 : index
    %c0_42 = arith.constant 0 : index
    %123 = vector.load %arg7[%122, %c0_41, %c0_42] : memref<4x8x512xf32, #tpu.memory_space<vmem>>, vector<1x8x512xf32>
    %124 = vector.shape_cast %123 : vector<1x8x512xf32> to vector<8x512xf32>
    %125 = arith.truncf %117 : vector<8x128xf32> to vector<8x128xbf16>
    %cst_43 = arith.constant dense<0.000000e+00> : vector<8x512xf32>
    %126 = tpu.matmul %125, %14, %cst_43 {dimension_numbers = #tpu.dot_dimension_numbers<[1], [0], [0], [1], [0, 0, 1, 1], [], []>} : vector<8x128xbf16>, vector<128x512xbf16>, vector<8x512xf32> -> vector<8x512xf32>
    %127 = arith.addf %124, %126 : vector<8x512xf32>
    %128 = vector.extract_strided_slice %127 {offsets = [0, 0], sizes = [8, 128], strides = [1, 1]} : vector<8x512xf32> to vector<8x128xf32>
    %129 = arith.negf %128 : vector<8x128xf32>
    %130 = math.exp %129 : vector<8x128xf32>
    %cst_44 = arith.constant 1.000000e+00 : f32
    %131 = vector.broadcast %cst_44 : f32 to vector<8x128xf32>
    %132 = arith.addf %131, %130 : vector<8x128xf32>
    %133 = arith.divf %131, %132 : vector<8x128xf32>
    %134 = vector.extract_strided_slice %127 {offsets = [0, 128], sizes = [8, 128], strides = [1, 1]} : vector<8x512xf32> to vector<8x128xf32>
    %135 = arith.negf %134 : vector<8x128xf32>
    %136 = math.exp %135 : vector<8x128xf32>
    %cst_45 = arith.constant 1.000000e+00 : f32
    %137 = vector.broadcast %cst_45 : f32 to vector<8x128xf32>
    %138 = arith.addf %137, %136 : vector<8x128xf32>
    %139 = arith.divf %137, %138 : vector<8x128xf32>
    %140 = vector.extract_strided_slice %127 {offsets = [0, 256], sizes = [8, 128], strides = [1, 1]} : vector<8x512xf32> to vector<8x128xf32>
    %141 = math.tanh %140 : vector<8x128xf32>
    %142 = arith.mulf %139, %109 : vector<8x128xf32>
    %143 = arith.mulf %133, %141 : vector<8x128xf32>
    %144 = arith.addf %142, %143 : vector<8x128xf32>
    %145 = vector.extract_strided_slice %127 {offsets = [0, 384], sizes = [8, 128], strides = [1, 1]} : vector<8x512xf32> to vector<8x128xf32>
    %146 = arith.negf %145 : vector<8x128xf32>
    %147 = math.exp %146 : vector<8x128xf32>
    %cst_46 = arith.constant 1.000000e+00 : f32
    %148 = vector.broadcast %cst_46 : f32 to vector<8x128xf32>
    %149 = arith.addf %148, %147 : vector<8x128xf32>
    %150 = arith.divf %148, %149 : vector<8x128xf32>
    %151 = math.tanh %144 : vector<8x128xf32>
    %152 = arith.mulf %150, %151 : vector<8x128xf32>
    %153 = arith.index_cast %c3_i32 : i32 to index
    %c0_47 = arith.constant 0 : index
    %c0_48 = arith.constant 0 : index
    %154 = vector.load %arg6[%153, %c0_47, %c0_48] : memref<4x8x128xf32, #tpu.memory_space<vmem>>, vector<1x8x128xf32>
    %155 = vector.shape_cast %154 : vector<1x8x128xf32> to vector<8x128xf32>
    %156 = vector.shape_cast %152 : vector<8x128xf32> to vector<1x8x128xf32>
    tpu.vector_store %arg6[%153, %c0_47, %c0_48], %156 {strides = array<i32>} : memref<4x8x128xf32, #tpu.memory_space<vmem>>, vector<1x8x128xf32>,
    %c4_i32 = arith.constant 4 : i32
    %c0_49 = arith.constant 0 : index
    %c0_50 = arith.constant 0 : index
    %157 = vector.load %arg8[%c0_49, %c0_50] : memref<8x128xf32, #tpu.memory_space<vmem>>, vector<8x128xf32>
    tpu.vector_store %arg8[%c0_49, %c0_50], %152 {strides = array<i32>} : memref<8x128xf32, #tpu.memory_space<vmem>>, vector<8x128xf32>,
    %c0_51 = arith.constant 0 : index
    %c0_52 = arith.constant 0 : index
    %158 = vector.load %arg9[%c0_51, %c0_52] : memref<8x128xf32, #tpu.memory_space<vmem>>, vector<8x128xf32>
    tpu.vector_store %arg9[%c0_51, %c0_52], %144 {strides = array<i32>} : memref<8x128xf32, #tpu.memory_space<vmem>>, vector<8x128xf32>,
    return
  }
  func.func @transform_0(%arg0: i32, %arg1: i32) -> (i32, i32, i32) {
    %c0_i32 = arith.constant 0 : i32
    %c0_i32_0 = arith.constant 0 : i32
    return %arg1, %arg0, %c0_i32 : i32, i32, i32
  }
  func.func @transform_1(%arg0: i32, %arg1: i32) -> (i32, i32) {
    %c0_i32 = arith.constant 0 : i32
    %c0_i32_0 = arith.constant 0 : i32
    %c0_i32_1 = arith.constant 0 : i32
    return %c0_i32, %c0_i32_0 : i32, i32
  }
  func.func @transform_2(%arg0: i32, %arg1: i32) -> (i32, i32) {
    %c0_i32 = arith.constant 0 : i32
    %c0_i32_0 = arith.constant 0 : i32
    %c0_i32_1 = arith.constant 0 : i32
    return %c0_i32, %c0_i32_0 : i32, i32
  }
  func.func @transform_3(%arg0: i32, %arg1: i32) -> (i32, i32) {
    %c0_i32 = arith.constant 0 : i32
    %c0_i32_0 = arith.constant 0 : i32
    %c0_i32_1 = arith.constant 0 : i32
    return %c0_i32, %c0_i32_0 : i32, i32
  }
  func.func @transform_4(%arg0: i32, %arg1: i32) -> (i32, i32, i32) {
    %c0_i32 = arith.constant 0 : i32
    %c0_i32_0 = arith.constant 0 : i32
    return %arg1, %arg0, %c0_i32 : i32, i32, i32
  }
}

</mosaic_0001>

<bundles_post_ra>
// kernel: tpu_custom_call.1
= control target key start
LH: loop header
LB: loop body
LE: loop exit
PB: predicated region body
PF: predicated region fallthrough
CT: control target
= control target key end

     0   :  { %9 = vsyncpa [#allocation6], 0  ;;  %s2440_s0 = inlined_call_operand.hbm [shape: f32[8,8,128], index: 0, kind: input, shape index: {}]   ;;  %s2441_s1 = inlined_call_operand.hbm [shape: bf16[128,512], index: 1, kind: input, shape index: {}]   ;;  %s2442_s2 = inlined_call_operand.hbm [shape: bf16[128,512], index: 2, kind: input, shape index: {}]   ;;  %s2443_s3 = inlined_call_operand.vmem [shape: f32[1,512], index: 3, kind: input, shape index: {}]   ;;  %s2444_s4 = inlined_call_operand.hbm [shape: f32[8,8,128], index: 4, kind: output, shape index: {}]  }
   0x1   :  { %11 = vsyncpa [#allocation6 + $0x1], 0 }
   0x2   :  { %12 = vsyncpa [#allocation9], 0 }
   0x3   :  { %13 = vsyncpa [#allocation7], 0 }
   0x4   :  { %15 = vsyncpa [#allocation7 + $0x1], 0  ;;  %s1987_s15 = smov 0   ;;  %s1989_s16 = smov 0  }
   0x5   :  { %s1991_s17 = smov 0   ;;  %s1993_s18 = smov 0  }
   0x6   :  { %s1995_s19 = smov 0   ;;  %s1997_s20 = smov 0  }
   0x7 LB: > { %s1428_s21 = sadd.s32 4294967295, %s1948_s20   ;;  %s1429_s22 = sadd.s32 4294967294, %s1948_s20   ;;  %s1948_s20 = sphi %s1997_s20, %s21_s20   ;;  %s1944_s19 = sphi %s1995_s19, %s2481_s19   ;;  %s1940_s18 = sphi %s1993_s18, %s2480_s18   ;;  %s1936_s17 = sphi %s1991_s17, %s2479_s17   ;;  %s1932_s16 = sphi %s1989_s16, %s2478_s16   ;;  %s1928_s15 = sphi %s1987_s15, %s2477_s15  }
   0x8   : > { %p55_p0 = scmp.ne.s32.totalorder %s1932_s16, %s1928_s15  ;;  %p2021_p1 = scmp.eq.s32.totalorder %s1428_s21, 0 }
   0x9   : > { %p2025_p2 = scmp.eq.s32.totalorder %s1428_s21, 1  ;;  %p150_p3 = scmp.eq.s32.totalorder %s1429_s22, 1 }
   0xa   : > { %s2450_s23 = scalar_select %p2021_p1, 1, 0 }
   0xb   : > { %p2031_p4 = por %p2021_p1, %p55_p0  ;;  %p1430_p5 = scmp.ge.s32.totalorder %s1948_s20, 1 }
   0xc   : > { %p2036_p6 = por %p150_p3, %p55_p0  ;;  %p157_p7 = scmp.lt.s32.totalorder %s1948_s20, 3 }
   0xd   : > { %s2452_s25 = scalar_select %p2031_p4, 1, 0 }
   0xe   : > { %s2453_s26 = scalar_select %p2036_p6, 1, 0 }
   0xf   : > { %p2041_p8 = pnand %p1430_p5, %p157_p7  ;;  %s1950_s28 = smov [#allocation8]  }
  0x10   : > { %s169_s29 = sshll.u32 %s1950_s28, 4  ;;  %s1951_s5 = smov [#allocation10]   ;;  %s170_s29 = int_to_ptr.vmem [resolvable:$true] %s169_s29 }
  0x11   : > { %p1545_p9 = pneg %p2041_p8  ;;  %s182_s6 = sshll.u32 %s1951_s5, 4  ;;  %s183_s6 = int_to_ptr.vmem [resolvable:$true] %s182_s6 }
  0x12   : > { %s1795_s7 = scalar_lea.vmem %s170_s29, 4096  ;;  %p1803_p5 = scmp.lt.s32.totalorder %s170_s29, %s170_s29 }
  0x13   : > { %p2050_p11 = pnand %p1545_p9, %p2021_p1  ;;  %p1796_p13 = scmp.ne.s32.totalorder %s170_s29, %s1795_s7 }
  0x14   : > { %p1804_p7 = scmp.lt.s32.totalorder %s1795_s7, %s1795_s7 }
  0x15   : > { %p1786_p12 = pneg %p2050_p11 }
  0x16   : > { %p1805_p10 = por %p1804_p7, %p1803_p5 }
  0x17   : > { %p1798_p0 = pnand %p1796_p13, %p1786_p12 }
  0x19   : > { %p1799_p3 = pneg %p1798_p0 }
  0x1b   : > { %p1806_p9 = pnand %p1805_p10, %p1799_p3 }
  0x1d   : > { %1809 = shalt.err (!%p1806_p9)
}
  0x1e   : > { %s1952_s8 = smov 256   ;;  %s1953_s9 = smov 16  }
  0x1f   : > { %1548 = dma.hbm_to_vmem [thread:$0]  (!%p2050_p11), %s2441_s1, 4096, %s170_s29, [#allocation9], %s1952_s8, %s1952_s8, %s1953_s9  }
  0x20   : > { %s1821_s12 = scalar_lea.vmem %s183_s6, 4096  ;;  %p1829_p1 = scmp.lt.s32.totalorder %s183_s6, %s183_s6 }
  0x21   : > { %p1822_p6 = scmp.ne.s32.totalorder %s183_s6, %s1821_s12  ;;  %p1830_p4 = scmp.lt.s32.totalorder %s1821_s12, %s1821_s12 }
  0x23   : > { %p1824_p13 = pnand %p1822_p6, %p1786_p12  ;;  %p1831_p5 = por %p1830_p4, %p1829_p1 }
  0x25   : > { %p1825_p0 = pneg %p1824_p13 }
  0x27   : > { %p1832_p10 = pnand %p1831_p5, %p1825_p0 }
  0x29   : > { %1835 = shalt.err (!%p1832_p10)
}
  0x2a   : > { %1551 = dma.hbm_to_vmem [thread:$0]  (!%p2050_p11), %s2442_s2, 4096, %s183_s6, [#allocation9], %s1952_s8, %s1952_s8, %s1953_s9  }
  0x2b   : > { %s30_s21 = sadd.s32 1, %s1944_s19  ;;  %s42_s22 = sadd.s32 1, %s1936_s17 }
  0x2c   : > { %p31_p1 = scmp.ge.s32.totalorder %s30_s21, 2  ;;  %p49_p4 = scmp.ne.s32.totalorder %s1936_s17, %s1932_s16 }
  0x2d   : > { %p50_p6 = scmp.eq.s32.totalorder %s1948_s20, 0  ;;  %p1562_p12 = scmp.lt.s32.totalorder %s1948_s20, 2 }
  0x2e   : > { %s2483_s21 = smov (%p31_p1, %s30_s21), 0  ;;  %p2082_p7 = por %p2025_p2, %p49_p4 }
  0x2f   : > { %p51_p3 = por %p50_p6, %p49_p4  ;;  %s37_s29 = ssub.s32 %s1944_s19, %s2483_s21 }
  0x30   : > { %s199_s30 = sand.u32 1, %s1936_s17   ;;  %p40_p9 = scmp.eq.s32.totalorder %s37_s29, 0 }
  0x31   : > { %s1434_s5 = sshll.u32 %s199_s30, 5  ;;  %s1529_s6 = sshll.u32 %s1944_s19, 9 }
  0x32   : > { %s2091_s7 = scalar_select %p40_p9, %s1936_s17, %s42_s22  }
  0x33   : > { %s210_s10 = scalar_lea.hbm %s2440_s0, %s1529_s6  ;;  %s203_s11 = scalar_lea.vmem [#allocation5], %s1434_s5 }
  0x34   : > { %s211_s12 = sshll.u32 %s203_s11, 4  ;;  %p2098_p11 = pnand %p1562_p12, %p51_p3  ;;  %s212_s12 = int_to_ptr.vmem [resolvable:$true] %s211_s12 }
  0x35   : > { %s200_s13 = scalar_lea.sflag [#allocation6], %s199_s30  ;;  %s1849_s14 = scalar_lea.vmem %s212_s12, 512 }
  0x36   : > { %p1838_p2 = pneg %p2098_p11  ;;  %p1850_p13 = scmp.ne.s32.totalorder %s212_s12, %s1849_s14 }
  0x37   : > { %s1954_s22 = smov [#allocation5]  }
  0x38   : > { %p1852_p0 = pnand %p1850_p13, %p1838_p2  ;;  %s1854_s29 = sshll.u32 %s1954_s22, 4  ;;  %s1855_s29 = int_to_ptr.vmem [resolvable:$false] %s1854_s29 }
  0x39   : > { %s1856_s6 = scalar_lea.vmem %s1855_s29, 1024  ;;  %p1857_p10 = scmp.lt.s32.totalorder %s212_s12, %s1855_s29 }
  0x3a   : > { %p1853_p5 = pneg %p1852_p0  ;;  %p1858_p1 = scmp.lt.s32.totalorder %s1856_s6, %s1849_s14 }
  0x3c   : > { %p1859_p4 = por %p1858_p1, %p1857_p10 }
  0x3e   : > { %p1860_p6 = pnand %p1859_p4, %p1853_p5 }
  0x40   : > { %1863 = shalt.err (!%p1860_p6)
}
  0x41   : > { %s1955_s5 = smov 128   ;;  %s1956_s8 = smov 8  }
  0x42   : > { %1555 = dma.hbm_to_vmem [thread:$0]  (!%p2098_p11), %s210_s10, 512, %s212_s12, %s200_s13, %s1955_s5, %s1955_s5, %s1956_s8  }
  0x43   : > { %223 = sbr.rel (%p2041_p8) target bundleno = 1170 (0x492), region = 36 }
  0x48   : > { %s2109_s30 = sand.u32 1, %s1932_s16   ;;  %p2458_p12 = scmp.ne.s32.totalorder %s2452_s25, 0 }
  0x49   : > { %s1438_s9 = sshll.u32 %s2109_s30, 5  ;;  %s226_s11 = scalar_lea.sflag [#allocation6], %s2109_s30 }
  0x4a   : > { %s2113_s14 = scalar_lea.vmem [#allocation5], %s1438_s9 }
  0x4b   : > { %1915 = dma.done.wait (%p2458_p12), %s226_s11, 512  }
  0x4c   : > { %1917 = vsyncadd (%p2458_p12), %s226_s11, 4294966784  ;;  %p2459_p3 = scmp.ne.s32.totalorder %s2450_s23, 0 }
  0x4e   : > { %1919 = dma.done.wait (%p2459_p3), [#allocation9], 8192  }
  0x4f   : > { %1921 = vsyncadd (%p2459_p3), [#allocation9], 4294959104  ;;  %s2123_s27 = scalar_lea.vmem [#allocation11], %s1438_s9  ;;  %p1442_p8 = scmp.ne.s32.totalorder %s1940_s18, 0 }
  0x51   : > { %268 = sbr.rel (%p1442_p8) target bundleno = 88 (0x58), region = 52 }
  0x56   : > { %v1957_v0 = vmov 0.0  }
  0x57   : > { %269 = vst [vmem:[#allocation3] sm:$0xff] %v1957_v0  ;;  %270 = vst [vmem:[#allocation4] sm:$0xff] %v1957_v0 }
  0x58 PF: > { %v1624_v1 = vld [vmem:[#allocation8 + $0xe4] ss:$16 sps:$4 sm:$0xff]   ;;  %v1626_v2 = vld [vmem:[#allocation8 + $0xec] ss:$16 sps:$4 sm:$0xff]   ;;  %v2448_v3 = vmov 0   ;;  %s1532_s10 = sshll.u32 %s1940_s18, 9 }
  0x59   : > { %515 = vmatprep.mubr.bf16.mxu0 %v2448_v3  ;;  %568 = vmatprep.mubr.bf16.mxu1 %v2448_v3  ;;  %v1628_v4 = vld [vmem:[#allocation8 + $0xe0] ss:$16 sps:$4 sm:$0xff]   ;;  %v1629_v5 = vld [vmem:[#allocation8 + $0xe8] ss:$16 sps:$4 sm:$0xff]   ;;  %v1630_v6 = vld [vmem:[#allocation8 + $0xc4] ss:$16 sps:$4 sm:$0xff]   ;;  %s2389_s22 = scalar_lea.hbm %s2444_s4, %s1532_s10 }
  0x5a   : > { %483 = vmatprep.subr.bf16.mxu0 %v1624_v1  ;;  %536 = vmatprep.subr.bf16.mxu1 %v1626_v2  ;;  %v1632_v7 = vld [vmem:[#allocation8 + $0xcc] ss:$16 sps:$4 sm:$0xff]   ;;  %v1634_v8 = vld [vmem:[#allocation8 + $0xc0] ss:$16 sps:$4 sm:$0xff]   ;;  %v1635_v9 = vld [vmem:[#allocation8 + $0xc8] ss:$16 sps:$4 sm:$0xff]  }
  0x5b   : > { %484 = vmatpush1.bf16.msra.mxu0 %v1628_v4  ;;  %537 = vmatpush1.bf16.msra.mxu1 %v1629_v5  ;;  %v1636_v10 = vld [vmem:[#allocation8 + $0xa4] ss:$16 sps:$4 sm:$0xff]   ;;  %v1638_v11 = vld [vmem:[#allocation8 + $0xac] ss:$16 sps:$4 sm:$0xff]   ;;  %v1640_v12 = vld [vmem:[#allocation8 + $0xa0] ss:$16 sps:$4 sm:$0xff]  }
  0x5c   : > { %485 = vmatprep.subr.bf16.mxu0 %v1630_v6  ;;  %538 = vmatprep.subr.bf16.mxu1 %v1632_v7  ;;  %v1641_v13 = vld [vmem:[#allocation8 + $0xa8] ss:$16 sps:$4 sm:$0xff]   ;;  %v1642_v14 = vld [vmem:[#allocation8 + $0x84] ss:$16 sps:$4 sm:$0xff]   ;;  %v1644_v15 = vld [vmem:[#allocation8 + $0x8c] ss:$16 sps:$4 sm:$0xff]  }
  0x5d   : > { %v1646_v16 = vld [vmem:[#allocation8 + $0x80] ss:$16 sps:$4 sm:$0xff]   ;;  %v1647_v17 = vld [vmem:[#allocation8 + $0x88] ss:$16 sps:$4 sm:$0xff]   ;;  %v1648_v18 = vld [vmem:[#allocation8 + $0x64] ss:$16 sps:$4 sm:$0xff]  }
  0x5e   : > { %v1650_v19 = vld [vmem:[#allocation8 + $0x6c] ss:$16 sps:$4 sm:$0xff]   ;;  %v1652_v20 = vld [vmem:[#allocation8 + $0x60] ss:$16 sps:$4 sm:$0xff]   ;;  %v1653_v21 = vld [vmem:[#allocation8 + $0x68] ss:$16 sps:$4 sm:$0xff]  }
  0x5f   : > { %486 = vmatpush1.bf16.msra.mxu0 %v1634_v8  ;;  %539 = vmatpush1.bf16.msra.mxu1 %v1635_v9  ;;  %v1654_v22 = vld [vmem:[#allocation8 + $0x44] ss:$16 sps:$4 sm:$0xff]   ;;  %v1656_v23 = vld [vmem:[#allocation8 + $0x4c] ss:$16 sps:$4 sm:$0xff]   ;;  %v1658_v24 = vld [vmem:[#allocation8 + $0x40] ss:$16 sps:$4 sm:$0xff]  }
  0x60   : > { %487 = vmatprep.subr.bf16.mxu0 %v1636_v10  ;;  %540 = vmatprep.subr.bf16.mxu1 %v1638_v11  ;;  %v1659_v25 = vld [vmem:[#allocation8 + $0x48] ss:$16 sps:$4 sm:$0xff]   ;;  %v1660_v26 = vld [vmem:[#allocation8 + $0x24] ss:$16 sps:$4 sm:$0xff]   ;;  %v1662_v27 = vld [vmem:[#allocation8 + $0x2c] ss:$16 sps:$4 sm:$0xff]   ;;  %v591_v11 = vlaneseq }
  0x61   : > { %v1664_v28 = vld [vmem:[#allocation8 + $0x20] ss:$16 sps:$4 sm:$0xff]   ;;  %v1665_v29 = vld [vmem:[#allocation8 + $0x28] ss:$16 sps:$4 sm:$0xff]   ;;  %v1666_v30 = vld [vmem:[#allocation8 + $0x4] ss:$16 sps:$4 sm:$0xff]  }
  0x62   : > { %v1668_v31 = vld [vmem:[#allocation8 + $0xc] ss:$16 sps:$4 sm:$0xff]   ;;  %v1670_v32 = vld [vmem:[#allocation8] ss:$16 sps:$4 sm:$0xff]   ;;  %v1671_v33 = vld [vmem:[#allocation8 + $0x8] ss:$16 sps:$4 sm:$0xff]  }
  0x63   : > { %488 = vmatpush1.bf16.msra.mxu0 %v1640_v12  ;;  %541 = vmatpush1.bf16.msra.mxu1 %v1641_v13  ;;  %v271_v34 = vld [vmem:[%s2113_s14] sm:$0xff]  ;;  %v272_v35 = vld [vmem:[%s2113_s14 + $0x8] sm:$0xff]  ;;  %v273_v46 = vld [vmem:[%s2113_s14 + $0x10] sm:$0xff]  ;;  %v592_v12 = vshrl.u32 %v591_v11, 7  ;;  %s1324_s12 = sshll.u32 %s2123_s27, 4  ;;  %s1310_s29 = scalar_lea.sflag [#allocation7], %s2109_s30  ;;  %s2391_s12 = int_to_ptr.vmem [resolvable:$true] %s1324_s12 }
  0x64   : > { %489 = vmatprep.subr.bf16.mxu0 %v1642_v14  ;;  %542 = vmatprep.subr.bf16.mxu1 %v1644_v15  ;;  %v2130_v36 = vld [vmem:[#allocation10 + $0xe4] ss:$16 sps:$4 sm:$0xff]   ;;  %v2132_v37 = vld [vmem:[#allocation10 + $0xec] ss:$16 sps:$4 sm:$0xff]   ;;  %v1530_v38 = vpack.c.bf16 %v272_v35, %v271_v34  ;;  %v2134_v39 = vld [vmem:[#allocation10 + $0xe0] ss:$16 sps:$4 sm:$0xff]  }
  0x65   : > { %v2136_v40 = vld [vmem:[#allocation10 + $0xe8] ss:$16 sps:$4 sm:$0xff]   ;;  %v2138_v41 = vld [vmem:[#allocation10 + $0xc4] ss:$16 sps:$4 sm:$0xff]   ;;  %v2142_v42 = vld [vmem:[#allocation10 + $0xcc] ss:$16 sps:$4 sm:$0xff]  }
  0x66   : > { %v2144_v43 = vld [vmem:[#allocation10 + $0xc0] ss:$16 sps:$4 sm:$0xff]   ;;  %v2146_v44 = vld [vmem:[#allocation10 + $0xc8] ss:$16 sps:$4 sm:$0xff]   ;;  %v2148_v45 = vld [vmem:[#allocation10 + $0xa4] ss:$16 sps:$4 sm:$0xff]  }
  0x67   : > { %490 = vmatpush1.bf16.msra.mxu0 %v1646_v16  ;;  %543 = vmatpush1.bf16.msra.mxu1 %v1647_v17  ;;  %v274_v47 = vld [vmem:[%s2113_s14 + $0x18] sm:$0xff]  ;;  %v2160_v49 = vld [vmem:[#allocation10 + $0xa0] ss:$16 sps:$4 sm:$0xff]   ;;  %v2166_v52 = vld [vmem:[#allocation10 + $0x84] ss:$16 sps:$4 sm:$0xff]   ;;  %v601_v13 = vsub.s32 2, %v592_v12 }
  0x68   : > { %491 = vmatprep.subr.bf16.mxu0 %v1648_v18  ;;  %544 = vmatprep.subr.bf16.mxu1 %v1650_v19  ;;  %v2156_v48 = vld [vmem:[#allocation10 + $0xac] ss:$16 sps:$4 sm:$0xff]   ;;  %v1531_v50 = vpack.c.bf16 %v274_v47, %v273_v46  ;;  %v2164_v51 = vld [vmem:[#allocation10 + $0xa8] ss:$16 sps:$4 sm:$0xff]   ;;  %v2174_v54 = vld [vmem:[#allocation10 + $0x80] ss:$16 sps:$4 sm:$0xff]  }
  0x69   : > { %v2170_v53 = vld [vmem:[#allocation10 + $0x8c] ss:$16 sps:$4 sm:$0xff]   ;;  %v2176_v55 = vld [vmem:[#allocation10 + $0x88] ss:$16 sps:$4 sm:$0xff]   ;;  %v2180_v56 = vld [vmem:[#allocation10 + $0x64] ss:$16 sps:$4 sm:$0xff]  }
  0x6a   : > { %v2182_v57 = vld [vmem:[#allocation10 + $0x6c] ss:$16 sps:$4 sm:$0xff]   ;;  %v2188_v58 = vld [vmem:[#allocation10 + $0x60] ss:$16 sps:$4 sm:$0xff]   ;;  %v2190_v59 = vld [vmem:[#allocation10 + $0x68] ss:$16 sps:$4 sm:$0xff]  }
  0x6b   : > { %492 = vmatpush1.bf16.msra.mxu0 %v1652_v20  ;;  %545 = vmatpush1.bf16.msra.mxu1 %v1653_v21  ;;  %v2194_v60 = vld [vmem:[#allocation10 + $0x44] ss:$16 sps:$4 sm:$0xff]   ;;  %v2196_v61 = vld [vmem:[#allocation10 + $0x4c] ss:$16 sps:$4 sm:$0xff]   ;;  %v2200_v62 = vld [vmem:[#allocation10 + $0x40] ss:$16 sps:$4 sm:$0xff]  }
  0x6c   : > { %493 = vmatprep.subr.bf16.mxu0 %v1654_v22  ;;  %546 = vmatprep.subr.bf16.mxu1 %v1656_v23  ;;  %v2202_v63 = vld [vmem:[#allocation10 + $0x48] ss:$16 sps:$4 sm:$0xff]   ;;  %v2206_v0 = vld [vmem:[#allocation10 + $0x24] ss:$16 sps:$4 sm:$0xff]   ;;  %v2208_v1 = vld [vmem:[#allocation10 + $0x2c] ss:$16 sps:$4 sm:$0xff]  }
  0x6d   : > { %v2212_v2 = vld [vmem:[#allocation10 + $0x20] ss:$16 sps:$4 sm:$0xff]   ;;  %v2214_v4 = vld [vmem:[#allocation10 + $0x28] ss:$16 sps:$4 sm:$0xff]   ;;  %v2218_v5 = vld [vmem:[#allocation10 + $0x4] ss:$16 sps:$4 sm:$0xff]  }
  0x6e   : > { %v2220_v6 = vld [vmem:[#allocation10 + $0xc] ss:$16 sps:$4 sm:$0xff]   ;;  %v2224_v7 = vld [vmem:[#allocation10] ss:$16 sps:$4 sm:$0xff]   ;;  %v2226_v8 = vld [vmem:[#allocation10 + $0x8] ss:$16 sps:$4 sm:$0xff]  }
  0x6f   : > { %494 = vmatpush1.bf16.msra.mxu0 %v1658_v24  ;;  %547 = vmatpush1.bf16.msra.mxu1 %v1659_v25  ;;  %v675_v9 = vld [vmem:[#allocation3] sm:$0xff]  ;;  %v593_v14 = vsub.s32 0, %v592_v12  ;;  %v605_v15 = vsub.s32 3, %v592_v12  ;;  %v597_v19 = vsub.s32 1, %v592_v12  ;;  %s1864_s6 = scalar_lea.vmem %s2391_s12, 512  ;;  %s1959_s18 = smov [#allocation11]  }
  0x70   : > { %495 = vmatprep.subr.bf16.mxu0 %v1660_v26  ;;  %548 = vmatprep.subr.bf16.mxu1 %v1662_v27  ;;  %v681_v10 = vpack.c.bf16 %v675_v9, %v675_v9  ;;  %v589_v17 = vld [vmem:[%s2443_s3] sm:$0xf]  ;;  %p1865_p9 = scmp.ne.s32.totalorder %s2391_s12, %s1864_s6  ;;  %s1868_s5 = sshll.u32 %s1959_s18, 4  ;;  %s1869_s5 = int_to_ptr.vmem [resolvable:$false] %s1868_s5 }
  0x71   : > { %v602_v20 = vrot.slane %v589_v17, %v601_v13  ;;  %v594_v23 = vrot.slane %v589_v17, %v593_v14  ;;  %v606_v24 = vrot.slane %v589_v17, %v605_v15  ;;  %v598_v27 = vrot.slane %v589_v17, %v597_v19  ;;  %s1870_s8 = scalar_lea.vmem %s1869_s5, 1024  ;;  %p1871_p13 = scmp.lt.s32.totalorder %s2391_s12, %s1869_s5 }
  0x72   : > { %p1866_p11 = pnand %p1865_p9, %p2082_p7  ;;  %p1872_p0 = scmp.lt.s32.totalorder %s1870_s8, %s1864_s6 }
  0x73   : > { %496 = vmatpush1.bf16.msra.mxu0 %v1664_v28  ;;  %549 = vmatpush1.bf16.msra.mxu1 %v1665_v29 }
  0x74   : > { %497 = vmatprep.subr.bf16.mxu0 %v1666_v30  ;;  %550 = vmatprep.subr.bf16.mxu1 %v1668_v31  ;;  %p1867_p2 = pneg %p1866_p11  ;;  %p1873_p5 = por %p1872_p0, %p1871_p13 }
  0x76   : > { %p1874_p10 = pnand %p1873_p5, %p1867_p2 }
  0x77   : > { %498 = vmatpush1.bf16.msra.mxu0 %v1670_v32  ;;  %551 = vmatpush1.bf16.msra.mxu1 %v1671_v33 }
  0x78   : > { %842 = vmatprep.subr.bf16.mxu0 %v2130_v36  ;;  %883 = vmatprep.subr.bf16.mxu1 %v2132_v37 }
  0x7a   : > { %516 = vmatmul.mubr.bf16.vlgmr.msra.gmra.mxu0 %v1530_v38  ;;  %569 = vmatmul.mubr.bf16.vlgmr.msra.gmra.mxu1 %v1530_v38 }
  0x7b   : > { %843 = vmatpush1.bf16.msra.mxu0 %v2134_v39  ;;  %884 = vmatpush1.bf16.msra.mxu1 %v2136_v40 }
  0x7c   : > { %844 = vmatprep.subr.bf16.mxu0 %v2138_v41  ;;  %885 = vmatprep.subr.bf16.mxu1 %v2142_v42 }
  0x7d   : > { %525 = vmatprep.mubr.bf16.mxu0 %v2448_v3  ;;  %578 = vmatprep.mubr.bf16.mxu1 %v2448_v3 }
  0x7f   : > { %845 = vmatpush1.bf16.msra.mxu0 %v2144_v43  ;;  %886 = vmatpush1.bf16.msra.mxu1 %v2146_v44 }
  0x80   : > { %846 = vmatprep.subr.bf16.mxu0 %v2148_v45  ;;  %887 = vmatprep.subr.bf16.mxu1 %v2156_v48 }
  0x82   : > { %526 = vmatmul.mubr.bf16.gmra.mxu0 %v1531_v50  ;;  %579 = vmatmul.mubr.bf16.gmra.mxu1 %v1531_v50 }
  0x83   : > { %847 = vmatpush1.bf16.msra.mxu0 %v2160_v49  ;;  %888 = vmatpush1.bf16.msra.mxu1 %v2164_v51 }
  0x84   : > { %848 = vmatprep.subr.bf16.mxu0 %v2166_v52  ;;  %889 = vmatprep.subr.bf16.mxu1 %v2170_v53 }
  0x85   : > { %874 = vmatprep.mubr.bf16.mxu0 %v2448_v3  ;;  %915 = vmatprep.mubr.bf16.mxu1 %v2448_v3 }
  0x87   : > { %849 = vmatpush1.bf16.msra.mxu0 %v2174_v54  ;;  %890 = vmatpush1.bf16.msra.mxu1 %v2176_v55 }
  0x88   : > { %850 = vmatprep.subr.bf16.mxu0 %v2180_v56  ;;  %891 = vmatprep.subr.bf16.mxu1 %v2182_v57 }
  0x8b   : > { %851 = vmatpush1.bf16.msra.mxu0 %v2188_v58  ;;  %892 = vmatpush1.bf16.msra.mxu1 %v2190_v59 }
  0x8c   : > { %852 = vmatprep.subr.bf16.mxu0 %v2194_v60  ;;  %893 = vmatprep.subr.bf16.mxu1 %v2196_v61 }
  0x8f   : > { %853 = vmatpush1.bf16.msra.mxu0 %v2200_v62  ;;  %894 = vmatpush1.bf16.msra.mxu1 %v2202_v63 }
  0x90   : > { %854 = vmatprep.subr.bf16.mxu0 %v2206_v0  ;;  %895 = vmatprep.subr.bf16.mxu1 %v2208_v1 }
  0x93   : > { %855 = vmatpush1.bf16.msra.mxu0 %v2212_v2  ;;  %896 = vmatpush1.bf16.msra.mxu1 %v2214_v4 }
  0x94   : > { %856 = vmatprep.subr.bf16.mxu0 %v2218_v5  ;;  %897 = vmatprep.subr.bf16.mxu1 %v2220_v6 }
  0x97   : > { %857 = vmatpush1.bf16.msra.mxu0 %v2224_v7  ;;  %898 = vmatpush1.bf16.msra.mxu1 %v2226_v8 }
  0x98   : > { %959 = vmatprep.subr.bf16.mxu0 %v2130_v36  ;;  %1000 = vmatprep.subr.bf16.mxu1 %v2132_v37 }
  0x9a   : > { %875 = vmatmul.mubr.bf16.vlgmr.msra.gmra.mxu0 %v681_v10  ;;  %916 = vmatmul.mubr.bf16.vlgmr.msra.gmra.mxu1 %v681_v10 }
  0x9b   : > { %960 = vmatpush1.bf16.msra.mxu0 %v2134_v39  ;;  %1001 = vmatpush1.bf16.msra.mxu1 %v2136_v40 }
  0x9c   : > { %961 = vmatprep.subr.bf16.mxu0 %v2138_v41  ;;  %1002 = vmatprep.subr.bf16.mxu1 %v2142_v42 }
  0x9d   : > { %991 = vmatprep.mubr.bf16.mxu0 %v2448_v3  ;;  %1032 = vmatprep.mubr.bf16.mxu1 %v2448_v3 }
  0x9f   : > { %962 = vmatpush1.bf16.msra.mxu0 %v2144_v43  ;;  %1003 = vmatpush1.bf16.msra.mxu1 %v2146_v44 }
  0xa0   : > { %963 = vmatprep.subr.bf16.mxu0 %v2148_v45  ;;  %1004 = vmatprep.subr.bf16.mxu1 %v2156_v48 }
  0xa3   : > { %964 = vmatpush1.bf16.msra.mxu0 %v2160_v49  ;;  %1005 = vmatpush1.bf16.msra.mxu1 %v2164_v51 }
  0xa4   : > { %965 = vmatprep.subr.bf16.mxu0 %v2166_v52  ;;  %1006 = vmatprep.subr.bf16.mxu1 %v2170_v53 }
  0xa7   : > { %966 = vmatpush1.bf16.msra.mxu0 %v2174_v54  ;;  %1007 = vmatpush1.bf16.msra.mxu1 %v2176_v55 }
  0xa8   : > { %967 = vmatprep.subr.bf16.mxu0 %v2180_v56  ;;  %1008 = vmatprep.subr.bf16.mxu1 %v2182_v57 }
  0xab   : > { %968 = vmatpush1.bf16.msra.mxu0 %v2188_v58  ;;  %1009 = vmatpush1.bf16.msra.mxu1 %v2190_v59 }
  0xac   : > { %969 = vmatprep.subr.bf16.mxu0 %v2194_v60  ;;  %1010 = vmatprep.subr.bf16.mxu1 %v2196_v61 }
  0xaf   : > { %970 = vmatpush1.bf16.msra.mxu0 %v2200_v62  ;;  %1011 = vmatpush1.bf16.msra.mxu1 %v2202_v63 }
  0xb0   : > { %971 = vmatprep.subr.bf16.mxu0 %v2206_v0  ;;  %1012 = vmatprep.subr.bf16.mxu1 %v2208_v1 }
  0xb3   : > { %972 = vmatpush1.bf16.msra.mxu0 %v2212_v2  ;;  %1013 = vmatpush1.bf16.msra.mxu1 %v2214_v4 }
  0xb4   : > { %973 = vmatprep.subr.bf16.mxu0 %v2218_v5  ;;  %1014 = vmatprep.subr.bf16.mxu1 %v2220_v6 }
  0xb7   : > { %974 = vmatpush1.bf16.msra.mxu0 %v2224_v7  ;;  %1015 = vmatpush1.bf16.msra.mxu1 %v2226_v8 }
  0xb8   : > { %1077 = vmatprep.subr.bf16.mxu0 %v2130_v36  ;;  %1118 = vmatprep.subr.bf16.mxu1 %v2132_v37 }
 0x13a   : > { %v517_v16 = vpop.f32.mrf.mxu0  ;;  %v570_v18 = vpop.f32.mrf.mxu1 }
 0x13c   : > { %v519_v21 = vpop.f32.mrf.mxu0  ;;  %v572_v22 = vpop.f32.mrf.mxu1 }
 0x13e   : > { %v521_v25 = vpop.f32.mrf.mxu0  ;;  %v574_v26 = vpop.f32.mrf.mxu1 }
 0x13f   : > { %v2271_v28 = vadd.f32 %v594_v23, %v521_v25  ;;  %v2273_v29 = vadd.f32 %v602_v20, %v574_v26  ;;  %v611_v26 = vadd.f32 %v594_v23, %v517_v16 }
 0x140   : > { %v523_v30 = vpop.f32.mrf.mxu0  ;;  %v576_v31 = vpop.f32.mrf.mxu1 }
 0x141   : > { %v2275_v32 = vadd.f32 %v598_v27, %v523_v30  ;;  %v2277_v33 = vadd.f32 %v606_v24, %v576_v31 }
 0x142   : > { %v527_v34 = vpop.f32.mrf.mxu0  ;;  %v580_v35 = vpop.f32.mrf.mxu1 }
 0x143   : > { %v2279_v38 = vadd.f32 %v594_v23, %v527_v34  ;;  %v2281_v46 = vadd.f32 %v602_v20, %v580_v35  ;;  %v612_v34 = vadd.f32 %v598_v27, %v519_v21 }
 0x144   : > { %v529_v47 = vpop.f32.mrf.mxu0  ;;  %v582_v50 = vpop.f32.mrf.mxu1 }
 0x145   : > { %2460 = vst [vmem:[#allocation15_spill] sm:$0xff] %v2281_v46  ;;  %v2283_v9 = vadd.f32 %v598_v27, %v529_v47  ;;  %v2285_v10 = vadd.f32 %v606_v24, %v582_v50 }
 0x146   : > { %v531_v11 = vpop.f32.mrf.mxu0  ;;  %v584_v12 = vpop.f32.mrf.mxu1 }
 0x147   : > { %2461 = vst [vmem:[#allocation16_spill] sm:$0xff] %v2283_v9  ;;  %2462 = vst [vmem:[#allocation17_spill] sm:$0xff] %v2285_v10  ;;  %v2287_v13 = vadd.f32 %v594_v23, %v531_v11  ;;  %v2289_v14 = vadd.f32 %v602_v20, %v584_v12 }
 0x148   : > { %v533_v15 = vpop.f32.mrf.mxu0  ;;  %v586_v17 = vpop.f32.mrf.mxu1 }
 0x149   : > { %2463 = vst [vmem:[#allocation18_spill] sm:$0xff] %v2287_v13  ;;  %2464 = vst [vmem:[#allocation19_spill] sm:$0xff] %v2289_v14  ;;  %v2291_v19 = vadd.f32 %v598_v27, %v533_v15  ;;  %v2293_v25 = vadd.f32 %v606_v24, %v586_v17  ;;  %v614_v15 = vadd.f32 %v606_v24, %v572_v22 }
 0x14a   : > { %v613_v17 = vadd.f32 %v602_v20, %v570_v18 }
 0x14b   : > { %2465 = vst [vmem:[#allocation20_spill] sm:$0xff] %v2291_v19  ;;  %2466 = vst [vmem:[#allocation21_spill] sm:$0xff] %v2293_v25 }
 0x15a   : > { %v876_v30 = vpop.f32.mrf.mxu0  ;;  %v917_v31 = vpop.f32.mrf.mxu1 }
 0x15b   : > { %v924_v35 = vadd.f32 %v876_v30, %v611_v26  ;;  %v926_v23 = vadd.f32 %v917_v31, %v613_v17  ;;  %v2467_v30 = vmov 0  }
 0x15c   : > { %v878_v47 = vpop.f32.mrf.mxu0  ;;  %v919_v50 = vpop.f32.mrf.mxu1 }
 0x15d   : > { %v1509_v3 = vmul.f32 -1.442695, %v924_v35  ;;  %v925_v46 = vadd.f32 %v878_v47, %v612_v34  ;;  %v927_v19 = vadd.f32 %v919_v50, %v614_v15 }
 0x15e   : > { %v880_v10 = vpop.f32.mrf.mxu0  ;;  %v921_v11 = vpop.f32.mrf.mxu1 }
 0x15f   : > { %1720 = vpow2.f32 %v1509_v3  ;;  %v1510_v12 = vmul.f32 -1.442695, %v925_v46  ;;  %v1511_v25 = vmul.f32 -1.442695, %v927_v19  ;;  %v676_v46 = vld [vmem:[#allocation4] sm:$0xff] }
 0x160   : > { %v881_v14 = vpop.f32.mrf.mxu0  ;;  %v922_v13 = vpop.f32.mrf.mxu1 }
 0x161   : > { %1722 = vpow2.f32 %v1510_v12 }
 0x162   : > { %1724 = vpow2.f32 %v1511_v25 }
 0x16c   : > { %v1721_v16 = vpop.eup %1720 }
 0x16d   : > { %v931_v9 = vadd.f32 1.0, %v1721_v16 }
 0x16e   : > { %v1723_v21 = vpop.eup %1722 }
 0x16f   : > { %1726 = vrcp.f32 %v931_v9  ;;  %v937_v27 = vadd.f32 1.0, %v1723_v21  ;;  %v1725_v10 = vpop.eup %1724 }
 0x170   : > { %1728 = vtanh.f32 %v926_v23  ;;  %v947_v26 = vadd.f32 1.0, %v1725_v10 }
 0x171   : > { %1730 = vrcp.f32 %v937_v27 }
 0x172   : > { %1732 = vrcp.f32 %v947_v26 }
 0x17c   : > { %v1727_v3 = vpop.eup %1726 }
 0x17d   : > { %v1729_v14 = vpop.eup %1728 }
 0x17e   : > { %v1731_v13 = vpop.eup %1730  ;;  %v942_v22 = vmul.f32 %v1729_v14, %v1727_v3 }
 0x17f   : > { %v941_v24 = vmul.f32 %v1731_v13, %v676_v46  ;;  %v1733_v20 = vpop.eup %1732 }
 0x181   : > { %v2295_v18 = vadd.f32 %v942_v22, %v941_v24 }
 0x183   : > { %1734 = vtanh.f32 %v2295_v18 }
 0x190   : > { %v1735_v19 = vpop.eup %1734 }
 0x191   : > { %v951_v9 = vmul.f32 %v1735_v19, %v1733_v20 }
 0x193   : > { %952 = vst [vmem:[%s2123_s27] sm:$0xff] %v951_v9  ;;  %v958_v25 = vpack.c.bf16 %v951_v9, %v951_v9 }
 0x195   : > { %992 = vmatmul.mubr.bf16.vlgmr.msra.gmra.mxu0 %v958_v25  ;;  %1033 = vmatmul.mubr.bf16.vlgmr.msra.gmra.mxu1 %v958_v25 }
 0x196   : > { %1078 = vmatpush1.bf16.msra.mxu0 %v2134_v39  ;;  %1119 = vmatpush1.bf16.msra.mxu1 %v2136_v40 }
 0x197   : > { %1079 = vmatprep.subr.bf16.mxu0 %v2138_v41  ;;  %1120 = vmatprep.subr.bf16.mxu1 %v2142_v42 }
 0x198   : > { %1109 = vmatprep.mubr.bf16.mxu0 %v2467_v30  ;;  %1150 = vmatprep.mubr.bf16.mxu1 %v2467_v30 }
 0x19a   : > { %1080 = vmatpush1.bf16.msra.mxu0 %v2144_v43  ;;  %1121 = vmatpush1.bf16.msra.mxu1 %v2146_v44 }
 0x19b   : > { %1081 = vmatprep.subr.bf16.mxu0 %v2148_v45  ;;  %1122 = vmatprep.subr.bf16.mxu1 %v2156_v48 }
 0x19e   : > { %1082 = vmatpush1.bf16.msra.mxu0 %v2160_v49  ;;  %1123 = vmatpush1.bf16.msra.mxu1 %v2164_v51 }
 0x19f   : > { %1083 = vmatprep.subr.bf16.mxu0 %v2166_v52  ;;  %1124 = vmatprep.subr.bf16.mxu1 %v2170_v53 }
 0x1a2   : > { %1084 = vmatpush1.bf16.msra.mxu0 %v2174_v54  ;;  %1125 = vmatpush1.bf16.msra.mxu1 %v2176_v55 }
 0x1a3   : > { %1085 = vmatprep.subr.bf16.mxu0 %v2180_v56  ;;  %1126 = vmatprep.subr.bf16.mxu1 %v2182_v57 }
 0x1a6   : > { %1086 = vmatpush1.bf16.msra.mxu0 %v2188_v58  ;;  %1127 = vmatpush1.bf16.msra.mxu1 %v2190_v59 }
 0x1a7   : > { %1087 = vmatprep.subr.bf16.mxu0 %v2194_v60  ;;  %1128 = vmatprep.subr.bf16.mxu1 %v2196_v61 }
 0x1aa   : > { %1088 = vmatpush1.bf16.msra.mxu0 %v2200_v62  ;;  %1129 = vmatpush1.bf16.msra.mxu1 %v2202_v63 }
 0x1ab   : > { %1089 = vmatprep.subr.bf16.mxu0 %v2206_v0  ;;  %1130 = vmatprep.subr.bf16.mxu1 %v2208_v1 }
 0x1ae   : > { %1090 = vmatpush1.bf16.msra.mxu0 %v2212_v2  ;;  %1131 = vmatpush1.bf16.msra.mxu1 %v2214_v4 }
 0x1af   : > { %1091 = vmatprep.subr.bf16.mxu0 %v2218_v5  ;;  %1132 = vmatprep.subr.bf16.mxu1 %v2220_v6 }
 0x1b2   : > { %1092 = vmatpush1.bf16.msra.mxu0 %v2224_v7  ;;  %1133 = vmatpush1.bf16.msra.mxu1 %v2226_v8 }
 0x1b3   : > { %1195 = vmatprep.subr.bf16.mxu0 %v2130_v36  ;;  %1236 = vmatprep.subr.bf16.mxu1 %v2132_v37 }
 0x255   : > { %v993_v31 = vpop.f32.mrf.mxu0  ;;  %v1034_v34 = vpop.f32.mrf.mxu1 }
 0x256   : > { %v1041_v35 = vadd.f32 %v993_v31, %v2271_v28  ;;  %v1043_v37 = vadd.f32 %v1034_v34, %v2273_v29 }
 0x257   : > { %v995_v47 = vpop.f32.mrf.mxu0  ;;  %v1036_v50 = vpop.f32.mrf.mxu1 }
 0x258   : > { %v1512_v11 = vmul.f32 -1.442695, %v1041_v35  ;;  %v1042_v12 = vadd.f32 %v995_v47, %v2275_v32  ;;  %v1044_v36 = vadd.f32 %v1036_v50, %v2277_v33  ;;  %v2471_v47 = vld [vmem:[#allocation18_spill] sm:$0xff] }
 0x259   : > { %v997_v15 = vpop.f32.mrf.mxu0  ;;  %v1038_v17 = vpop.f32.mrf.mxu1 }
 0x25a   : > { %1736 = vpow2.f32 %v1512_v11  ;;  %v1513_v16 = vmul.f32 -1.442695, %v1042_v12  ;;  %v1514_v27 = vmul.f32 -1.442695, %v1044_v36  ;;  %v2472_v17 = vld [vmem:[#allocation20_spill] sm:$0xff] }
 0x25b   : > { %v998_v23 = vpop.f32.mrf.mxu0  ;;  %v1039_v21 = vpop.f32.mrf.mxu1 }
 0x25c   : > { %1738 = vpow2.f32 %v1513_v16 }
 0x25d   : > { %1740 = vtanh.f32 %v1043_v37 }
 0x25e   : > { %1742 = vpow2.f32 %v1514_v27 }
 0x267   : > { %v1737_v10 = vpop.eup %1736 }
 0x268   : > { %v1048_v3 = vadd.f32 1.0, %v1737_v10  ;;  %v2473_v10 = vld [vmem:[#allocation21_spill] sm:$0xff] }
 0x269   : > { %v1739_v28 = vpop.eup %1738 }
 0x26a   : > { %1744 = vrcp.f32 %v1048_v3  ;;  %v1054_v32 = vadd.f32 1.0, %v1739_v28  ;;  %v1741_v46 = vpop.eup %1740  ;;  %v2474_v28 = vld [vmem:[#allocation19_spill] sm:$0xff] }
 0x26b   : > { %v1743_v14 = vpop.eup %1742 }
 0x26c   : > { %1746 = vrcp.f32 %v1054_v32  ;;  %v1064_v24 = vadd.f32 1.0, %v1743_v14 }
 0x26e   : > { %1748 = vrcp.f32 %v1064_v24 }
 0x277   : > { %v1745_v13 = vpop.eup %1744 }
 0x278   : > { %v1059_v26 = vmul.f32 %v1745_v13, %v1741_v46 }
 0x279   : > { %v1747_v22 = vpop.eup %1746 }
 0x27a   : > { %v1058_v33 = vmul.f32 %v1747_v22, %v2295_v18 }
 0x27b   : > { %v1749_v29 = vpop.eup %1748 }
 0x27c   : > { %v2338_v20 = vadd.f32 %v1059_v26, %v1058_v33 }
 0x27e   : > { %1750 = vtanh.f32 %v2338_v20 }
 0x28b   : > { %v1751_v19 = vpop.eup %1750 }
 0x28c   : > { %v1068_v9 = vmul.f32 %v1751_v19, %v1749_v29 }
 0x28e   : > { %1515 = vst [vmem:[%s2123_s27 + $0x8] sm:$0xff] %v1068_v9  ;;  %v1076_v25 = vpack.c.bf16 %v1068_v9, %v1068_v9 }
 0x290   : > { %1110 = vmatmul.mubr.bf16.vlgmr.msra.gmra.mxu0 %v1076_v25  ;;  %1151 = vmatmul.mubr.bf16.vlgmr.msra.gmra.mxu1 %v1076_v25 }
 0x291   : > { %1196 = vmatpush1.bf16.msra.mxu0 %v2134_v39  ;;  %1237 = vmatpush1.bf16.msra.mxu1 %v2136_v40 }
 0x292   : > { %1197 = vmatprep.subr.bf16.mxu0 %v2138_v41  ;;  %1238 = vmatprep.subr.bf16.mxu1 %v2142_v42 }
 0x293   : > { %1227 = vmatprep.mubr.bf16.mxu0 %v2467_v30  ;;  %1268 = vmatprep.mubr.bf16.mxu1 %v2467_v30 }
 0x295   : > { %1198 = vmatpush1.bf16.msra.mxu0 %v2144_v43  ;;  %1239 = vmatpush1.bf16.msra.mxu1 %v2146_v44 }
 0x296   : > { %1199 = vmatprep.subr.bf16.mxu0 %v2148_v45  ;;  %1240 = vmatprep.subr.bf16.mxu1 %v2156_v48  ;;  %v2468_v45 = vld [vmem:[#allocation16_spill] sm:$0xff] }
 0x299   : > { %1200 = vmatpush1.bf16.msra.mxu0 %v2160_v49  ;;  %1241 = vmatpush1.bf16.msra.mxu1 %v2164_v51 }
 0x29a   : > { %1201 = vmatprep.subr.bf16.mxu0 %v2166_v52  ;;  %1242 = vmatprep.subr.bf16.mxu1 %v2170_v53 }
 0x29d   : > { %1202 = vmatpush1.bf16.msra.mxu0 %v2174_v54  ;;  %1243 = vmatpush1.bf16.msra.mxu1 %v2176_v55  ;;  %v2469_v55 = vld [vmem:[#allocation17_spill] sm:$0xff] }
 0x29e   : > { %1203 = vmatprep.subr.bf16.mxu0 %v2180_v56  ;;  %1244 = vmatprep.subr.bf16.mxu1 %v2182_v57  ;;  %v2470_v57 = vld [vmem:[#allocation15_spill] sm:$0xff] }
 0x2a1   : > { %1204 = vmatpush1.bf16.msra.mxu0 %v2188_v58  ;;  %1245 = vmatpush1.bf16.msra.mxu1 %v2190_v59 }
 0x2a2   : > { %1205 = vmatprep.subr.bf16.mxu0 %v2194_v60  ;;  %1246 = vmatprep.subr.bf16.mxu1 %v2196_v61 }
 0x2a5   : > { %1206 = vmatpush1.bf16.msra.mxu0 %v2200_v62  ;;  %1247 = vmatpush1.bf16.msra.mxu1 %v2202_v63 }
 0x2a6   : > { %1207 = vmatprep.subr.bf16.mxu0 %v2206_v0  ;;  %1248 = vmatprep.subr.bf16.mxu1 %v2208_v1 }
 0x2a9   : > { %1208 = vmatpush1.bf16.msra.mxu0 %v2212_v2  ;;  %1249 = vmatpush1.bf16.msra.mxu1 %v2214_v4 }
 0x2aa   : > { %1209 = vmatprep.subr.bf16.mxu0 %v2218_v5  ;;  %1250 = vmatprep.subr.bf16.mxu1 %v2220_v6 }
 0x2ad   : > { %1210 = vmatpush1.bf16.msra.mxu0 %v2224_v7  ;;  %1251 = vmatpush1.bf16.msra.mxu1 %v2226_v8 }
 0x350   : > { %v1111_v39 = vpop.f32.mrf.mxu0  ;;  %v1152_v40 = vpop.f32.mrf.mxu1 }
 0x351   : > { %v1159_v41 = vadd.f32 %v1111_v39, %v2279_v38  ;;  %v1161_v58 = vadd.f32 %v1152_v40, %v2470_v57 }
 0x352   : > { %v1113_v42 = vpop.f32.mrf.mxu0  ;;  %v1154_v43 = vpop.f32.mrf.mxu1 }
 0x353   : > { %v1516_v44 = vmul.f32 -1.442695, %v1159_v41  ;;  %v1160_v48 = vadd.f32 %v1113_v42, %v2468_v45  ;;  %v1162_v56 = vadd.f32 %v1154_v43, %v2469_v55 }
 0x354   : > { %v1115_v49 = vpop.f32.mrf.mxu0  ;;  %v1156_v51 = vpop.f32.mrf.mxu1 }
 0x355   : > { %1752 = vpow2.f32 %v1516_v44  ;;  %v1517_v52 = vmul.f32 -1.442695, %v1160_v48  ;;  %v1518_v59 = vmul.f32 -1.442695, %v1162_v56 }
 0x356   : > { %v1116_v53 = vpop.f32.mrf.mxu0  ;;  %v1157_v54 = vpop.f32.mrf.mxu1 }
 0x357   : > { %1754 = vpow2.f32 %v1517_v52 }
 0x358   : > { %1756 = vtanh.f32 %v1161_v58 }
 0x359   : > { %1758 = vpow2.f32 %v1518_v59 }
 0x362   : > { %v1753_v60 = vpop.eup %1752 }
 0x363   : > { %v1166_v61 = vadd.f32 1.0, %v1753_v60 }
 0x364   : > { %v1755_v62 = vpop.eup %1754 }
 0x365   : > { %1760 = vrcp.f32 %v1166_v61  ;;  %v1172_v63 = vadd.f32 1.0, %v1755_v62  ;;  %v1757_v0 = vpop.eup %1756 }
 0x366   : > { %v1759_v1 = vpop.eup %1758 }
 0x367   : > { %1762 = vrcp.f32 %v1172_v63  ;;  %v1182_v6 = vadd.f32 1.0, %v1759_v1 }
 0x369   : > { %1764 = vrcp.f32 %v1182_v6 }
 0x372   : > { %v1761_v2 = vpop.eup %1760 }
 0x373   : > { %v1177_v4 = vmul.f32 %v1761_v2, %v1757_v0 }
 0x374   : > { %v1763_v5 = vpop.eup %1762 }
 0x375   : > { %v1176_v7 = vmul.f32 %v1763_v5, %v2338_v20 }
 0x376   : > { %v1765_v38 = vpop.eup %1764 }
 0x377   : > { %v1178_v8 = vadd.f32 %v1177_v4, %v1176_v7 }
 0x379   : > { %1766 = vtanh.f32 %v1178_v8 }
 0x386   : > { %v1767_v18 = vpop.eup %1766 }
 0x387   : > { %v1186_v30 = vmul.f32 %v1767_v18, %v1765_v38 }
 0x389   : > { %1519 = vst [vmem:[%s2123_s27 + $0x10] sm:$0xff] %v1186_v30  ;;  %v1194_v31 = vpack.c.bf16 %v1186_v30, %v1186_v30 }
 0x38b   : > { %1228 = vmatmul.mubr.bf16.vlgmr.msra.gmra.mxu0 %v1194_v31  ;;  %1269 = vmatmul.mubr.bf16.vlgmr.msra.gmra.mxu1 %v1194_v31 }
 0x44b   : > { %v1229_v34 = vpop.f32.mrf.mxu0  ;;  %v1270_v35 = vpop.f32.mrf.mxu1 }
 0x44c   : > { %v1277_v50 = vadd.f32 %v1229_v34, %v2471_v47  ;;  %v1279_v32 = vadd.f32 %v1270_v35, %v2474_v28 }
 0x44d   : > { %v1231_v11 = vpop.f32.mrf.mxu0  ;;  %v1272_v12 = vpop.f32.mrf.mxu1 }
 0x44e   : > { %v1520_v15 = vmul.f32 -1.442695, %v1277_v50  ;;  %v1278_v16 = vadd.f32 %v1231_v11, %v2472_v17  ;;  %v1280_v3 = vadd.f32 %v1272_v12, %v2473_v10 }
 0x44f   : > { %v1233_v23 = vpop.f32.mrf.mxu0  ;;  %v1274_v21 = vpop.f32.mrf.mxu1 }
 0x450   : > { %1768 = vpow2.f32 %v1520_v15  ;;  %v1521_v36 = vmul.f32 -1.442695, %v1278_v16  ;;  %v1522_v46 = vmul.f32 -1.442695, %v1280_v3 }
 0x451   : > { %v1234_v37 = vpop.f32.mrf.mxu0  ;;  %v1275_v27 = vpop.f32.mrf.mxu1 }
 0x452   : > { %1770 = vpow2.f32 %v1521_v36 }
 0x453   : > { %1772 = vtanh.f32 %v1279_v32 }
 0x454   : > { %1774 = vpow2.f32 %v1522_v46 }
 0x45d   : > { %v1769_v14 = vpop.eup %1768 }
 0x45e   : > { %v1284_v13 = vadd.f32 1.0, %v1769_v14 }
 0x45f   : > { %v1771_v26 = vpop.eup %1770 }
 0x460   : > { %1776 = vrcp.f32 %v1284_v13  ;;  %v1290_v22 = vadd.f32 1.0, %v1771_v26  ;;  %v1773_v24 = vpop.eup %1772 }
 0x461   : > { %v1775_v33 = vpop.eup %1774 }
 0x462   : > { %1778 = vrcp.f32 %v1290_v22  ;;  %v1300_v9 = vadd.f32 1.0, %v1775_v33 }
 0x464   : > { %1780 = vrcp.f32 %v1300_v9 }
 0x46d   : > { %v1777_v20 = vpop.eup %1776 }
 0x46e   : > { %v1295_v29 = vmul.f32 %v1777_v20, %v1773_v24 }
 0x46f   : > { %v1779_v19 = vpop.eup %1778 }
 0x470   : > { %v1294_v25 = vmul.f32 %v1779_v19, %v1178_v8 }
 0x471   : > { %v1781_v40 = vpop.eup %1780 }
 0x472   : > { %v1296_v39 = vadd.f32 %v1295_v29, %v1294_v25 }
 0x474   : > { %1782 = vtanh.f32 %v1296_v39  ;;  %1308 = vst [vmem:[#allocation4] sm:$0xff] %v1296_v39 }
 0x481   : > { %v1783_v41 = vpop.eup %1782 }
 0x482   : > { %v1304_v42 = vmul.f32 %v1783_v41, %v1781_v40 }
 0x484   : > { %1307 = vst [vmem:[#allocation3] sm:$0xff] %v1304_v42  ;;  %1523 = vst [vmem:[%s2123_s27 + $0x18] sm:$0xff] %v1304_v42 }
 0x485   : > { %1877 = shalt.err (!%p1874_p10)
}
 0x486   : > { %s1878_s9 = scalar_lea.hbm %s2389_s22, 512  ;;  %s1882_s27 = scalar_lea.hbm %s2444_s4, 1024 }
 0x487   : > { %p1879_p1 = scmp.ne.s32.totalorder %s2389_s22, %s1878_s9  ;;  %p1883_p12 = scmp.lt.s32.totalorder %s2389_s22, %s2444_s4 }
 0x488   : > { %p1884_p3 = scmp.lt.s32.totalorder %s1882_s27, %s1878_s9 }
 0x489   : > { %p1880_p4 = pnand %p1879_p1, %p2082_p7 }
 0x48a   : > { %p1885_p8 = por %p1884_p3, %p1883_p12 }
 0x48b   : > { %p1881_p6 = pneg %p1880_p4 }
 0x48d   : > { %p1886_p9 = pnand %p1885_p8, %p1881_p6 }
 0x48f   : > { %1889 = shalt.err (!%p1886_p9)
}
 0x490   : > { %s1960_s10 = smov 128   ;;  %s1961_s24 = smov 8  }
 0x491   : > { %1543 = dma.vmem_to_hbm [thread:$0]  (%p2082_p7), %s2391_s12, 512, %s2389_s22, %s1310_s29, %s1960_s10, %s1960_s10, %s1961_s24  }
 0x492 PF: > { %s1339_s13 = sand.u32 1, %s1928_s15   ;;  %p2475_p11 = scmp.ne.s32.totalorder %s2453_s26, 0 }
 0x493   : > { %p2476_p2 = scmp.ge.s32.totalorder %s1948_s20, 2  ;;  %s1340_s6 = scalar_lea.sflag [#allocation7], %s1339_s13 }
 0x495   : > { %p1557_p13 = pnand %p2476_p2, %p2475_p11 }
 0x497   : > { %p1558_p0 = pneg %p1557_p13 }
 0x499   : > { %1923 = dma.done.wait (%p1558_p0), %s1340_s6, 512  }
 0x49a   : > { %1925 = vsyncadd (%p1558_p0), %s1340_s6, 4294966784  ;;  %s21_s20 = sadd.s32 1, %s1948_s20   ;;  %s2477_s15 = smov %s1932_s16 }
 0x49b   : > { %p18_p5 = scmp.ge.s32.totalorder %s21_s20, 4   ;;  %s2478_s16 = smov %s1936_s17 }
 0x49c   : > { %s2479_s17 = smov %s2091_s7  ;;  %s2480_s18 = smov %s1944_s19 }
 0x49d   : > { %s2481_s19 = smov %s2483_s21  ;;  %20 = sbr.rel (!%p18_p5) target bundleno = 7 (0x7), region = 99 }
 0x4a2   :  { %1345 = vsyncpa [#allocation6], 1 }
 0x4a3   :  { %1347 = vsyncpa [#allocation6 + $0x1], 1 }
 0x4a4   :  { %1348 = vsyncpa [#allocation9], 1 }
 0x4a5   :  { %1349 = vsyncpa [#allocation7], 1 }
 0x4a6   :  { %1351 = vsyncpa [#allocation7 + $0x1], 1 }

// kernel: tpu_custom_call.1
= control target key start
LH: loop header
LB: loop body
LE: loop exit
PB: predicated region body
PF: predicated region fallthrough
CT: control target
= control target key end

     0   :  { %9 = vsyncpa [#allocation6], 0  ;;  %s2440_s0 = inlined_call_operand.hbm [shape: f32[8,8,128], index: 0, kind: input, shape index: {}]   ;;  %s2441_s1 = inlined_call_operand.hbm [shape: bf16[128,512], index: 1, kind: input, shape index: {}]   ;;  %s2442_s2 = inlined_call_operand.hbm [shape: bf16[128,512], index: 2, kind: input, shape index: {}]   ;;  %s2443_s3 = inlined_call_operand.vmem [shape: f32[1,512], index: 3, kind: input, shape index: {}]   ;;  %s2444_s4 = inlined_call_operand.hbm [shape: f32[8,8,128], index: 4, kind: output, shape index: {}]  }
   0x1   :  { %11 = vsyncpa [#allocation6 + $0x1], 0 }
   0x2   :  { %12 = vsyncpa [#allocation9], 0 }
   0x3   :  { %13 = vsyncpa [#allocation7], 0 }
   0x4   :  { %15 = vsyncpa [#allocation7 + $0x1], 0  ;;  %s1987_s15 = smov 0   ;;  %s1989_s16 = smov 0  }
   0x5   :  { %s1991_s17 = smov 0   ;;  %s1993_s18 = smov 0  }
   0x6   :  { %s1995_s19 = smov 0   ;;  %s1997_s20 = smov 0  }
   0x7 LB: > { %s1428_s21 = sadd.s32 4294967295, %s1948_s20   ;;  %s1429_s22 = sadd.s32 4294967294, %s1948_s20   ;;  %s1948_s20 = sphi %s1997_s20, %s21_s20   ;;  %s1944_s19 = sphi %s1995_s19, %s2481_s19   ;;  %s1940_s18 = sphi %s1993_s18, %s2480_s18   ;;  %s1936_s17 = sphi %s1991_s17, %s2479_s17   ;;  %s1932_s16 = sphi %s1989_s16, %s2478_s16   ;;  %s1928_s15 = sphi %s1987_s15, %s2477_s15  }
   0x8   : > { %p55_p0 = scmp.ne.s32.totalorder %s1932_s16, %s1928_s15  ;;  %p2021_p1 = scmp.eq.s32.totalorder %s1428_s21, 0 }
   0x9   : > { %p2025_p2 = scmp.eq.s32.totalorder %s1428_s21, 1  ;;  %p150_p3 = scmp.eq.s32.totalorder %s1429_s22, 1 }
   0xa   : > { %s2450_s23 = scalar_select %p2021_p1, 1, 0 }
   0xb   : > { %p2031_p4 = por %p2021_p1, %p55_p0  ;;  %p1430_p5 = scmp.ge.s32.totalorder %s1948_s20, 1 }
   0xc   : > { %p2036_p6 = por %p150_p3, %p55_p0  ;;  %p157_p7 = scmp.lt.s32.totalorder %s1948_s20, 3 }
   0xd   : > { %s2452_s25 = scalar_select %p2031_p4, 1, 0 }
   0xe   : > { %s2453_s26 = scalar_select %p2036_p6, 1, 0 }
   0xf   : > { %p2041_p8 = pnand %p1430_p5, %p157_p7  ;;  %s1950_s28 = smov [#allocation8]  }
  0x10   : > { %s169_s29 = sshll.u32 %s1950_s28, 4  ;;  %s1951_s5 = smov [#allocation10]   ;;  %s170_s29 = int_to_ptr.vmem [resolvable:$true] %s169_s29 }
  0x11   : > { %p1545_p9 = pneg %p2041_p8  ;;  %s182_s6 = sshll.u32 %s1951_s5, 4  ;;  %s183_s6 = int_to_ptr.vmem [resolvable:$true] %s182_s6 }
  0x12   : > { %s1795_s7 = scalar_lea.vmem %s170_s29, 4096  ;;  %p1803_p5 = scmp.lt.s32.totalorder %s170_s29, %s170_s29 }
  0x13   : > { %p2050_p11 = pnand %p1545_p9, %p2021_p1  ;;  %p1796_p13 = scmp.ne.s32.totalorder %s170_s29, %s1795_s7 }
  0x14   : > { %p1804_p7 = scmp.lt.s32.totalorder %s1795_s7, %s1795_s7 }
  0x15   : > { %p1786_p12 = pneg %p2050_p11 }
  0x16   : > { %p1805_p10 = por %p1804_p7, %p1803_p5 }
  0x17   : > { %p1798_p0 = pnand %p1796_p13, %p1786_p12 }
  0x19   : > { %p1799_p3 = pneg %p1798_p0 }
  0x1b   : > { %p1806_p9 = pnand %p1805_p10, %p1799_p3 }
  0x1d   : > { %1809 = shalt.err (!%p1806_p9)
}
  0x1e   : > { %s1952_s8 = smov 256   ;;  %s1953_s9 = smov 16  }
  0x1f   : > { %1548 = dma.hbm_to_vmem [thread:$0]  (!%p2050_p11), %s2441_s1, 4096, %s170_s29, [#allocation9], %s1952_s8, %s1952_s8, %s1953_s9  }
  0x20   : > { %s1821_s12 = scalar_lea.vmem %s183_s6, 4096  ;;  %p1829_p1 = scmp.lt.s32.totalorder %s183_s6, %s183_s6 }
  0x21   : > { %p1822_p6 = scmp.ne.s32.totalorder %s183_s6, %s1821_s12  ;;  %p1830_p4 = scmp.lt.s32.totalorder %s1821_s12, %s1821_s12 }
  0x23   : > { %p1824_p13 = pnand %p1822_p6, %p1786_p12  ;;  %p1831_p5 = por %p1830_p4, %p1829_p1 }
  0x25   : > { %p1825_p0 = pneg %p1824_p13 }
  0x27   : > { %p1832_p10 = pnand %p1831_p5, %p1825_p0 }
  0x29   : > { %1835 = shalt.err (!%p1832_p10)
}
  0x2a   : > { %1551 = dma.hbm_to_vmem [thread:$0]  (!%p2050_p11), %s2442_s2, 4096, %s183_s6, [#allocation9], %s1952_s8, %s1952_s8, %s1953_s9  }
  0x2b   : > { %s30_s21 = sadd.s32 1, %s1944_s19  ;;  %s42_s22 = sadd.s32 1, %s1936_s17 }
  0x2c   : > { %p31_p1 = scmp.ge.s32.totalorder %s30_s21, 2  ;;  %p49_p4 = scmp.ne.s32.totalorder %s1936_s17, %s1932_s16 }
  0x2d   : > { %p50_p6 = scmp.eq.s32.totalorder %s1948_s20, 0  ;;  %p1562_p12 = scmp.lt.s32.totalorder %s1948_s20, 2 }
  0x2e   : > { %s2483_s21 = smov (%p31_p1, %s30_s21), 0  ;;  %p2082_p7 = por %p2025_p2, %p49_p4 }
  0x2f   : > { %p51_p3 = por %p50_p6, %p49_p4  ;;  %s37_s29 = ssub.s32 %s1944_s19, %s2483_s21 }
  0x30   : > { %s199_s30 = sand.u32 1, %s1936_s17   ;;  %p40_p9 = scmp.eq.s32.totalorder %s37_s29, 0 }
  0x31   : > { %s1434_s5 = sshll.u32 %s199_s30, 5  ;;  %s1529_s6 = sshll.u32 %s1944_s19, 9 }
  0x32   : > { %s2091_s7 = scalar_select %p40_p9, %s1936_s17, %s42_s22  }
  0x33   : > { %s210_s10 = scalar_lea.hbm %s2440_s0, %s1529_s6  ;;  %s203_s11 = scalar_lea.vmem [#allocation5], %s1434_s5 }
  0x34   : > { %s211_s12 = sshll.u32 %s203_s11, 4  ;;  %p2098_p11 = pnand %p1562_p12, %p51_p3  ;;  %s212_s12 = int_to_ptr.vmem [resolvable:$true] %s211_s12 }
  0x35   : > { %s200_s13 = scalar_lea.sflag [#allocation6], %s199_s30  ;;  %s1849_s14 = scalar_lea.vmem %s212_s12, 512 }
  0x36   : > { %p1838_p2 = pneg %p2098_p11  ;;  %p1850_p13 = scmp.ne.s32.totalorder %s212_s12, %s1849_s14 }
  0x37   : > { %s1954_s22 = smov [#allocation5]  }
  0x38   : > { %p1852_p0 = pnand %p1850_p13, %p1838_p2  ;;  %s1854_s29 = sshll.u32 %s1954_s22, 4  ;;  %s1855_s29 = int_to_ptr.vmem [resolvable:$false] %s1854_s29 }
  0x39   : > { %s1856_s6 = scalar_lea.vmem %s1855_s29, 1024  ;;  %p1857_p10 = scmp.lt.s32.totalorder %s212_s12, %s1855_s29 }
  0x3a   : > { %p1853_p5 = pneg %p1852_p0  ;;  %p1858_p1 = scmp.lt.s32.totalorder %s1856_s6, %s1849_s14 }
  0x3c   : > { %p1859_p4 = por %p1858_p1, %p1857_p10 }
  0x3e   : > { %p1860_p6 = pnand %p1859_p4, %p1853_p5 }
  0x40   : > { %1863 = shalt.err (!%p1860_p6)
}
  0x41   : > { %s1955_s5 = smov 128   ;;  %s1956_s8 = smov 8  }
  0x42   : > { %1555 = dma.hbm_to_vmem [thread:$0]  (!%p2098_p11), %s210_s10, 512, %s212_s12, %s200_s13, %s1955_s5, %s1955_s5, %s1956_s8  }
  0x43   : > { %223 = sbr.rel (%p2041_p8) target bundleno = 1170 (0x492), region = 36 }
  0x48   : > { %s2109_s30 = sand.u32 1, %s1932_s16   ;;  %p2458_p12 = scmp.ne.s32.totalorder %s2452_s25, 0 }
  0x49   : > { %s1438_s9 = sshll.u32 %s2109_s30, 5  ;;  %s226_s11 = scalar_lea.sflag [#allocation6], %s2109_s30 }
  0x4a   : > { %s2113_s14 = scalar_lea.vmem [#allocation5], %s1438_s9 }
  0x4b   : > { %1915 = dma.done.wait (%p2458_p12), %s226_s11, 512  }
  0x4c   : > { %1917 = vsyncadd (%p2458_p12), %s226_s11, 4294966784  ;;  %p2459_p3 = scmp.ne.s32.totalorder %s2450_s23, 0 }
  0x4e   : > { %1919 = dma.done.wait (%p2459_p3), [#allocation9], 8192  }
  0x4f   : > { %1921 = vsyncadd (%p2459_p3), [#allocation9], 4294959104  ;;  %s2123_s27 = scalar_lea.vmem [#allocation11], %s1438_s9  ;;  %p1442_p8 = scmp.ne.s32.totalorder %s1940_s18, 0 }
  0x51   : > { %268 = sbr.rel (%p1442_p8) target bundleno = 88 (0x58), region = 52 }
  0x56   : > { %v1957_v0 = vmov 0.0  }
  0x57   : > { %269 = vst [vmem:[#allocation3] sm:$0xff] %v1957_v0  ;;  %270 = vst [vmem:[#allocation4] sm:$0xff] %v1957_v0 }
  0x58 PF: > { %v1624_v1 = vld [vmem:[#allocation8 + $0xe4] ss:$16 sps:$4 sm:$0xff]   ;;  %v1626_v2 = vld [vmem:[#allocation8 + $0xec] ss:$16 sps:$4 sm:$0xff]   ;;  %v2448_v3 = vmov 0   ;;  %s1532_s10 = sshll.u32 %s1940_s18, 9 }
  0x59   : > { %515 = vmatprep.mubr.bf16.mxu0 %v2448_v3  ;;  %568 = vmatprep.mubr.bf16.mxu1 %v2448_v3  ;;  %v1628_v4 = vld [vmem:[#allocation8 + $0xe0] ss:$16 sps:$4 sm:$0xff]   ;;  %v1629_v5 = vld [vmem:[#allocation8 + $0xe8] ss:$16 sps:$4 sm:$0xff]   ;;  %v1630_v6 = vld [vmem:[#allocation8 + $0xc4] ss:$16 sps:$4 sm:$0xff]   ;;  %s2389_s22 = scalar_lea.hbm %s2444_s4, %s1532_s10 }
  0x5a   : > { %483 = vmatprep.subr.bf16.mxu0 %v1624_v1  ;;  %536 = vmatprep.subr.bf16.mxu1 %v1626_v2  ;;  %v1632_v7 = vld [vmem:[#allocation8 + $0xcc] ss:$16 sps:$4 sm:$0xff]   ;;  %v1634_v8 = vld [vmem:[#allocation8 + $0xc0] ss:$16 sps:$4 sm:$0xff]   ;;  %v1635_v9 = vld [vmem:[#allocation8 + $0xc8] ss:$16 sps:$4 sm:$0xff]  }
  0x5b   : > { %484 = vmatpush1.bf16.msra.mxu0 %v1628_v4  ;;  %537 = vmatpush1.bf16.msra.mxu1 %v1629_v5  ;;  %v1636_v10 = vld [vmem:[#allocation8 + $0xa4] ss:$16 sps:$4 sm:$0xff]   ;;  %v1638_v11 = vld [vmem:[#allocation8 + $0xac] ss:$16 sps:$4 sm:$0xff]   ;;  %v1640_v12 = vld [vmem:[#allocation8 + $0xa0] ss:$16 sps:$4 sm:$0xff]  }
  0x5c   : > { %485 = vmatprep.subr.bf16.mxu0 %v1630_v6  ;;  %538 = vmatprep.subr.bf16.mxu1 %v1632_v7  ;;  %v1641_v13 = vld [vmem:[#allocation8 + $0xa8] ss:$16 sps:$4 sm:$0xff]   ;;  %v1642_v14 = vld [vmem:[#allocation8 + $0x84] ss:$16 sps:$4 sm:$0xff]   ;;  %v1644_v15 = vld [vmem:[#allocation8 + $0x8c] ss:$16 sps:$4 sm:$0xff]  }
  0x5d   : > { %v1646_v16 = vld [vmem:[#allocation8 + $0x80] ss:$16 sps:$4 sm:$0xff]   ;;  %v1647_v17 = vld [vmem:[#allocation8 + $0x88] ss:$16 sps:$4 sm:$0xff]   ;;  %v1648_v18 = vld [vmem:[#allocation8 + $0x64] ss:$16 sps:$4 sm:$0xff]  }
  0x5e   : > { %v1650_v19 = vld [vmem:[#allocation8 + $0x6c] ss:$16 sps:$4 sm:$0xff]   ;;  %v1652_v20 = vld [vmem:[#allocation8 + $0x60] ss:$16 sps:$4 sm:$0xff]   ;;  %v1653_v21 = vld [vmem:[#allocation8 + $0x68] ss:$16 sps:$4 sm:$0xff]  }
  0x5f   : > { %486 = vmatpush1.bf16.msra.mxu0 %v1634_v8  ;;  %539 = vmatpush1.bf16.msra.mxu1 %v1635_v9  ;;  %v1654_v22 = vld [vmem:[#allocation8 + $0x44] ss:$16 sps:$4 sm:$0xff]   ;;  %v1656_v23 = vld [vmem:[#allocation8 + $0x4c] ss:$16 sps:$4 sm:$0xff]   ;;  %v1658_v24 = vld [vmem:[#allocation8 + $0x40] ss:$16 sps:$4 sm:$0xff]  }
  0x60   : > { %487 = vmatprep.subr.bf16.mxu0 %v1636_v10  ;;  %540 = vmatprep.subr.bf16.mxu1 %v1638_v11  ;;  %v1659_v25 = vld [vmem:[#allocation8 + $0x48] ss:$16 sps:$4 sm:$0xff]   ;;  %v1660_v26 = vld [vmem:[#allocation8 + $0x24] ss:$16 sps:$4 sm:$0xff]   ;;  %v1662_v27 = vld [vmem:[#allocation8 + $0x2c] ss:$16 sps:$4 sm:$0xff]   ;;  %v591_v11 = vlaneseq }
  0x61   : > { %v1664_v28 = vld [vmem:[#allocation8 + $0x20] ss:$16 sps:$4 sm:$0xff]   ;;  %v1665_v29 = vld [vmem:[#allocation8 + $0x28] ss:$16 sps:$4 sm:$0xff]   ;;  %v1666_v30 = vld [vmem:[#allocation8 + $0x4] ss:$16 sps:$4 sm:$0xff]  }
  0x62   : > { %v1668_v31 = vld [vmem:[#allocation8 + $0xc] ss:$16 sps:$4 sm:$0xff]   ;;  %v1670_v32 = vld [vmem:[#allocation8] ss:$16 sps:$4 sm:$0xff]   ;;  %v1671_v33 = vld [vmem:[#allocation8 + $0x8] ss:$16 sps:$4 sm:$0xff]  }
  0x63   : > { %488 = vmatpush1.bf16.msra.mxu0 %v1640_v12  ;;  %541 = vmatpush1.bf16.msra.mxu1 %v1641_v13  ;;  %v271_v34 = vld [vmem:[%s2113_s14] sm:$0xff]  ;;  %v272_v35 = vld [vmem:[%s2113_s14 + $0x8] sm:$0xff]  ;;  %v273_v46 = vld [vmem:[%s2113_s14 + $0x10] sm:$0xff]  ;;  %v592_v12 = vshrl.u32 %v591_v11, 7  ;;  %s1324_s12 = sshll.u32 %s2123_s27, 4  ;;  %s1310_s29 = scalar_lea.sflag [#allocation7], %s2109_s30  ;;  %s2391_s12 = int_to_ptr.vmem [resolvable:$true] %s1324_s12 }
  0x64   : > { %489 = vmatprep.subr.bf16.mxu0 %v1642_v14  ;;  %542 = vmatprep.subr.bf16.mxu1 %v1644_v15  ;;  %v2130_v36 = vld [vmem:[#allocation10 + $0xe4] ss:$16 sps:$4 sm:$0xff]   ;;  %v2132_v37 = vld [vmem:[#allocation10 + $0xec] ss:$16 sps:$4 sm:$0xff]   ;;  %v1530_v38 = vpack.c.bf16 %v272_v35, %v271_v34  ;;  %v2134_v39 = vld [vmem:[#allocation10 + $0xe0] ss:$16 sps:$4 sm:$0xff]  }
  0x65   : > { %v2136_v40 = vld [vmem:[#allocation10 + $0xe8] ss:$16 sps:$4 sm:$0xff]   ;;  %v2138_v41 = vld [vmem:[#allocation10 + $0xc4] ss:$16 sps:$4 sm:$0xff]   ;;  %v2142_v42 = vld [vmem:[#allocation10 + $0xcc] ss:$16 sps:$4 sm:$0xff]  }
  0x66   : > { %v2144_v43 = vld [vmem:[#allocation10 + $0xc0] ss:$16 sps:$4 sm:$0xff]   ;;  %v2146_v44 = vld [vmem:[#allocation10 + $0xc8] ss:$16 sps:$4 sm:$0xff]   ;;  %v2148_v45 = vld [vmem:[#allocation10 + $0xa4] ss:$16 sps:$4 sm:$0xff]  }
  0x67   : > { %490 = vmatpush1.bf16.msra.mxu0 %v1646_v16  ;;  %543 = vmatpush1.bf16.msra.mxu1 %v1647_v17  ;;  %v274_v47 = vld [vmem:[%s2113_s14 + $0x18] sm:$0xff]  ;;  %v2160_v49 = vld [vmem:[#allocation10 + $0xa0] ss:$16 sps:$4 sm:$0xff]   ;;  %v2166_v52 = vld [vmem:[#allocation10 + $0x84] ss:$16 sps:$4 sm:$0xff]   ;;  %v601_v13 = vsub.s32 2, %v592_v12 }
  0x68   : > { %491 = vmatprep.subr.bf16.mxu0 %v1648_v18  ;;  %544 = vmatprep.subr.bf16.mxu1 %v1650_v19  ;;  %v2156_v48 = vld [vmem:[#allocation10 + $0xac] ss:$16 sps:$4 sm:$0xff]   ;;  %v1531_v50 = vpack.c.bf16 %v274_v47, %v273_v46  ;;  %v2164_v51 = vld [vmem:[#allocation10 + $0xa8] ss:$16 sps:$4 sm:$0xff]   ;;  %v2174_v54 = vld [vmem:[#allocation10 + $0x80] ss:$16 sps:$4 sm:$0xff]  }
  0x69   : > { %v2170_v53 = vld [vmem:[#allocation10 + $0x8c] ss:$16 sps:$4 sm:$0xff]   ;;  %v2176_v55 = vld [vmem:[#allocation10 + $0x88] ss:$16 sps:$4 sm:$0xff]   ;;  %v2180_v56 = vld [vmem:[#allocation10 + $0x64] ss:$16 sps:$4 sm:$0xff]  }
  0x6a   : > { %v2182_v57 = vld [vmem:[#allocation10 + $0x6c] ss:$16 sps:$4 sm:$0xff]   ;;  %v2188_v58 = vld [vmem:[#allocation10 + $0x60] ss:$16 sps:$4 sm:$0xff]   ;;  %v2190_v59 = vld [vmem:[#allocation10 + $0x68] ss:$16 sps:$4 sm:$0xff]  }
  0x6b   : > { %492 = vmatpush1.bf16.msra.mxu0 %v1652_v20  ;;  %545 = vmatpush1.bf16.msra.mxu1 %v1653_v21  ;;  %v2194_v60 = vld [vmem:[#allocation10 + $0x44] ss:$16 sps:$4 sm:$0xff]   ;;  %v2196_v61 = vld [vmem:[#allocation10 + $0x4c] ss:$16 sps:$4 sm:$0xff]   ;;  %v2200_v62 = vld [vmem:[#allocation10 + $0x40] ss:$16 sps:$4 sm:$0xff]  }
  0x6c   : > { %493 = vmatprep.subr.bf16.mxu0 %v1654_v22  ;;  %546 = vmatprep.subr.bf16.mxu1 %v1656_v23  ;;  %v2202_v63 = vld [vmem:[#allocation10 + $0x48] ss:$16 sps:$4 sm:$0xff]   ;;  %v2206_v0 = vld [vmem:[#allocation10 + $0x24] ss:$16 sps:$4 sm:$0xff]   ;;  %v2208_v1 = vld [vmem:[#allocation10 + $0x2c] ss:$16 sps:$4 sm:$0xff]  }
  0x6d   : > { %v2212_v2 = vld [vmem:[#allocation10 + $0x20] ss:$16 sps:$4 sm:$0xff]   ;;  %v2214_v4 = vld [vmem:[#allocation10 + $0x28] ss:$16 sps:$4 sm:$0xff]   ;;  %v2218_v5 = vld [vmem:[#allocation10 + $0x4] ss:$16 sps:$4 sm:$0xff]  }
  0x6e   : > { %v2220_v6 = vld [vmem:[#allocation10 + $0xc] ss:$16 sps:$4 sm:$0xff]   ;;  %v2224_v7 = vld [vmem:[#allocation10] ss:$16 sps:$4 sm:$0xff]   ;;  %v2226_v8 = vld [vmem:[#allocation10 + $0x8] ss:$16 sps:$4 sm:$0xff]  }
  0x6f   : > { %494 = vmatpush1.bf16.msra.mxu0 %v1658_v24  ;;  %547 = vmatpush1.bf16.msra.mxu1 %v1659_v25  ;;  %v675_v9 = vld [vmem:[#allocation3] sm:$0xff]  ;;  %v593_v14 = vsub.s32 0, %v592_v12  ;;  %v605_v15 = vsub.s32 3, %v592_v12  ;;  %v597_v19 = vsub.s32 1, %v592_v12  ;;  %s1864_s6 = scalar_lea.vmem %s2391_s12, 512  ;;  %s1959_s18 = smov [#allocation11]  }
  0x70   : > { %495 = vmatprep.subr.bf16.mxu0 %v1660_v26  ;;  %548 = vmatprep.subr.bf16.mxu1 %v1662_v27  ;;  %v681_v10 = vpack.c.bf16 %v675_v9, %v675_v9  ;;  %v589_v17 = vld [vmem:[%s2443_s3] sm:$0xf]  ;;  %p1865_p9 = scmp.ne.s32.totalorder %s2391_s12, %s1864_s6  ;;  %s1868_s5 = sshll.u32 %s1959_s18, 4  ;;  %s1869_s5 = int_to_ptr.vmem [resolvable:$false] %s1868_s5 }
  0x71   : > { %v602_v20 = vrot.slane %v589_v17, %v601_v13  ;;  %v594_v23 = vrot.slane %v589_v17, %v593_v14  ;;  %v606_v24 = vrot.slane %v589_v17, %v605_v15  ;;  %v598_v27 = vrot.slane %v589_v17, %v597_v19  ;;  %s1870_s8 = scalar_lea.vmem %s1869_s5, 1024  ;;  %p1871_p13 = scmp.lt.s32.totalorder %s2391_s12, %s1869_s5 }
  0x72   : > { %p1866_p11 = pnand %p1865_p9, %p2082_p7  ;;  %p1872_p0 = scmp.lt.s32.totalorder %s1870_s8, %s1864_s6 }
  0x73   : > { %496 = vmatpush1.bf16.msra.mxu0 %v1664_v28  ;;  %549 = vmatpush1.bf16.msra.mxu1 %v1665_v29 }
  0x74   : > { %497 = vmatprep.subr.bf16.mxu0 %v1666_v30  ;;  %550 = vmatprep.subr.bf16.mxu1 %v1668_v31  ;;  %p1867_p2 = pneg %p1866_p11  ;;  %p1873_p5 = por %p1872_p0, %p1871_p13 }
  0x76   : > { %p1874_p10 = pnand %p1873_p5, %p1867_p2 }
  0x77   : > { %498 = vmatpush1.bf16.msra.mxu0 %v1670_v32  ;;  %551 = vmatpush1.bf16.msra.mxu1 %v1671_v33 }
  0x78   : > { %842 = vmatprep.subr.bf16.mxu0 %v2130_v36  ;;  %883 = vmatprep.subr.bf16.mxu1 %v2132_v37 }
  0x7a   : > { %516 = vmatmul.mubr.bf16.vlgmr.msra.gmra.mxu0 %v1530_v38  ;;  %569 = vmatmul.mubr.bf16.vlgmr.msra.gmra.mxu1 %v1530_v38 }
  0x7b   : > { %843 = vmatpush1.bf16.msra.mxu0 %v2134_v39  ;;  %884 = vmatpush1.bf16.msra.mxu1 %v2136_v40 }
  0x7c   : > { %844 = vmatprep.subr.bf16.mxu0 %v2138_v41  ;;  %885 = vmatprep.subr.bf16.mxu1 %v2142_v42 }
  0x7d   : > { %525 = vmatprep.mubr.bf16.mxu0 %v2448_v3  ;;  %578 = vmatprep.mubr.bf16.mxu1 %v2448_v3 }
  0x7f   : > { %845 = vmatpush1.bf16.msra.mxu0 %v2144_v43  ;;  %886 = vmatpush1.bf16.msra.mxu1 %v2146_v44 }
  0x80   : > { %846 = vmatprep.subr.bf16.mxu0 %v2148_v45  ;;  %887 = vmatprep.subr.bf16.mxu1 %v2156_v48 }
  0x82   : > { %526 = vmatmul.mubr.bf16.gmra.mxu0 %v1531_v50  ;;  %579 = vmatmul.mubr.bf16.gmra.mxu1 %v1531_v50 }
  0x83   : > { %847 = vmatpush1.bf16.msra.mxu0 %v2160_v49  ;;  %888 = vmatpush1.bf16.msra.mxu1 %v2164_v51 }
  0x84   : > { %848 = vmatprep.subr.bf16.mxu0 %v2166_v52  ;;  %889 = vmatprep.subr.bf16.mxu1 %v2170_v53 }
  0x85   : > { %874 = vmatprep.mubr.bf16.mxu0 %v2448_v3  ;;  %915 = vmatprep.mubr.bf16.mxu1 %v2448_v3 }
  0x87   : > { %849 = vmatpush1.bf16.msra.mxu0 %v2174_v54  ;;  %890 = vmatpush1.bf16.msra.mxu1 %v2176_v55 }
  0x88   : > { %850 = vmatprep.subr.bf16.mxu0 %v2180_v56  ;;  %891 = vmatprep.subr.bf16.mxu1 %v2182_v57 }
  0x8b   : > { %851 = vmatpush1.bf16.msra.mxu0 %v2188_v58  ;;  %892 = vmatpush1.bf16.msra.mxu1 %v2190_v59 }
  0x8c   : > { %852 = vmatprep.subr.bf16.mxu0 %v2194_v60  ;;  %893 = vmatprep.subr.bf16.mxu1 %v2196_v61 }
  0x8f   : > { %853 = vmatpush1.bf16.msra.mxu0 %v2200_v62  ;;  %894 = vmatpush1.bf16.msra.mxu1 %v2202_v63 }
  0x90   : > { %854 = vmatprep.subr.bf16.mxu0 %v2206_v0  ;;  %895 = vmatprep.subr.bf16.mxu1 %v2208_v1 }
  0x93   : > { %855 = vmatpush1.bf16.msra.mxu0 %v2212_v2  ;;  %896 = vmatpush1.bf16.msra.mxu1 %v2214_v4 }
  0x94   : > { %856 = vmatprep.subr.bf16.mxu0 %v2218_v5  ;;  %897 = vmatprep.subr.bf16.mxu1 %v2220_v6 }
  0x97   : > { %857 = vmatpush1.bf16.msra.mxu0 %v2224_v7  ;;  %898 = vmatpush1.bf16.msra.mxu1 %v2226_v8 }
  0x98   : > { %959 = vmatprep.subr.bf16.mxu0 %v2130_v36  ;;  %1000 = vmatprep.subr.bf16.mxu1 %v2132_v37 }
  0x9a   : > { %875 = vmatmul.mubr.bf16.vlgmr.msra.gmra.mxu0 %v681_v10  ;;  %916 = vmatmul.mubr.bf16.vlgmr.msra.gmra.mxu1 %v681_v10 }
  0x9b   : > { %960 = vmatpush1.bf16.msra.mxu0 %v2134_v39  ;;  %1001 = vmatpush1.bf16.msra.mxu1 %v2136_v40 }
  0x9c   : > { %961 = vmatprep.subr.bf16.mxu0 %v2138_v41  ;;  %1002 = vmatprep.subr.bf16.mxu1 %v2142_v42 }
  0x9d   : > { %991 = vmatprep.mubr.bf16.mxu0 %v2448_v3  ;;  %1032 = vmatprep.mubr.bf16.mxu1 %v2448_v3 }
  0x9f   : > { %962 = vmatpush1.bf16.msra.mxu0 %v2144_v43  ;;  %1003 = vmatpush1.bf16.msra.mxu1 %v2146_v44 }
  0xa0   : > { %963 = vmatprep.subr.bf16.mxu0 %v2148_v45  ;;  %1004 = vmatprep.subr.bf16.mxu1 %v2156_v48 }
  0xa3   : > { %964 = vmatpush1.bf16.msra.mxu0 %v2160_v49  ;;  %1005 = vmatpush1.bf16.msra.mxu1 %v2164_v51 }
  0xa4   : > { %965 = vmatprep.subr.bf16.mxu0 %v2166_v52  ;;  %1006 = vmatprep.subr.bf16.mxu1 %v2170_v53 }
  0xa7   : > { %966 = vmatpush1.bf16.msra.mxu0 %v2174_v54  ;;  %1007 = vmatpush1.bf16.msra.mxu1 %v2176_v55 }
  0xa8   : > { %967 = vmatprep.subr.bf16.mxu0 %v2180_v56  ;;  %1008 = vmatprep.subr.bf16.mxu1 %v2182_v57 }
  0xab   : > { %968 = vmatpush1.bf16.msra.mxu0 %v2188_v58  ;;  %1009 = vmatpush1.bf16.msra.mxu1 %v2190_v59 }
  0xac   : > { %969 = vmatprep.subr.bf16.mxu0 %v2194_v60  ;;  %1010 = vmatprep.subr.bf16.mxu1 %v2196_v61 }
  0xaf   : > { %970 = vmatpush1.bf16.msra.mxu0 %v2200_v62  ;;  %1011 = vmatpush1.bf16.msra.mxu1 %v2202_v63 }
  0xb0   : > { %971 = vmatprep.subr.bf16.mxu0 %v2206_v0  ;;  %1012 = vmatprep.subr.bf16.mxu1 %v2208_v1 }
  0xb3   : > { %972 = vmatpush1.bf16.msra.mxu0 %v2212_v2  ;;  %1013 = vmatpush1.bf16.msra.mxu1 %v2214_v4 }
  0xb4   : > { %973 = vmatprep.subr.bf16.mxu0 %v2218_v5  ;;  %1014 = vmatprep.subr.bf16.mxu1 %v2220_v6 }
  0xb7   : > { %974 = vmatpush1.bf16.msra.mxu0 %v2224_v7  ;;  %1015 = vmatpush1.bf16.msra.mxu1 %v2226_v8 }
  0xb8   : > { %1077 = vmatprep.subr.bf16.mxu0 %v2130_v36  ;;  %1118 = vmatprep.subr.bf16.mxu1 %v2132_v37 }
 0x13a   : > { %v517_v16 = vpop.f32.mrf.mxu0  ;;  %v570_v18 = vpop.f32.mrf.mxu1 }
 0x13c   : > { %v519_v21 = vpop.f32.mrf.mxu0  ;;  %v572_v22 = vpop.f32.mrf.mxu1 }
 0x13e   : > { %v521_v25 = vpop.f32.mrf.mxu0  ;;  %v574_v26 = vpop.f32.mrf.mxu1 }
 0x13f   : > { %v2271_v28 = vadd.f32 %v594_v23, %v521_v25  ;;  %v2273_v29 = vadd.f32 %v602_v20, %v574_v26  ;;  %v611_v26 = vadd.f32 %v594_v23, %v517_v16 }
 0x140   : > { %v523_v30 = vpop.f32.mrf.mxu0  ;;  %v576_v31 = vpop.f32.mrf.mxu1 }
 0x141   : > { %v2275_v32 = vadd.f32 %v598_v27, %v523_v30  ;;  %v2277_v33 = vadd.f32 %v606_v24, %v576_v31 }
 0x142   : > { %v527_v34 = vpop.f32.mrf.mxu0  ;;  %v580_v35 = vpop.f32.mrf.mxu1 }
 0x143   : > { %v2279_v38 = vadd.f32 %v594_v23, %v527_v34  ;;  %v2281_v46 = vadd.f32 %v602_v20, %v580_v35  ;;  %v612_v34 = vadd.f32 %v598_v27, %v519_v21 }
 0x144   : > { %v529_v47 = vpop.f32.mrf.mxu0  ;;  %v582_v50 = vpop.f32.mrf.mxu1 }
 0x145   : > { %2460 = vst [vmem:[#allocation15_spill] sm:$0xff] %v2281_v46  ;;  %v2283_v9 = vadd.f32 %v598_v27, %v529_v47  ;;  %v2285_v10 = vadd.f32 %v606_v24, %v582_v50 }
 0x146   : > { %v531_v11 = vpop.f32.mrf.mxu0  ;;  %v584_v12 = vpop.f32.mrf.mxu1 }
 0x147   : > { %2461 = vst [vmem:[#allocation16_spill] sm:$0xff] %v2283_v9  ;;  %2462 = vst [vmem:[#allocation17_spill] sm:$0xff] %v2285_v10  ;;  %v2287_v13 = vadd.f32 %v594_v23, %v531_v11  ;;  %v2289_v14 = vadd.f32 %v602_v20, %v584_v12 }
 0x148   : > { %v533_v15 = vpop.f32.mrf.mxu0  ;;  %v586_v17 = vpop.f32.mrf.mxu1 }
 0x149   : > { %2463 = vst [vmem:[#allocation18_spill] sm:$0xff] %v2287_v13  ;;  %2464 = vst [vmem:[#allocation19_spill] sm:$0xff] %v2289_v14  ;;  %v2291_v19 = vadd.f32 %v598_v27, %v533_v15  ;;  %v2293_v25 = vadd.f32 %v606_v24, %v586_v17  ;;  %v614_v15 = vadd.f32 %v606_v24, %v572_v22 }
 0x14a   : > { %v613_v17 = vadd.f32 %v602_v20, %v570_v18 }
 0x14b   : > { %2465 = vst [vmem:[#allocation20_spill] sm:$0xff] %v2291_v19  ;;  %2466 = vst [vmem:[#allocation21_spill] sm:$0xff] %v2293_v25 }
 0x15a   : > { %v876_v30 = vpop.f32.mrf.mxu0  ;;  %v917_v31 = vpop.f32.mrf.mxu1 }
 0x15b   : > { %v924_v35 = vadd.f32 %v876_v30, %v611_v26  ;;  %v926_v23 = vadd.f32 %v917_v31, %v613_v17  ;;  %v2467_v30 = vmov 0  }
 0x15c   : > { %v878_v47 = vpop.f32.mrf.mxu0  ;;  %v919_v50 = vpop.f32.mrf.mxu1 }
 0x15d   : > { %v1509_v3 = vmul.f32 -1.442695, %v924_v35  ;;  %v925_v46 = vadd.f32 %v878_v47, %v612_v34  ;;  %v927_v19 = vadd.f32 %v919_v50, %v614_v15 }
 0x15e   : > { %v880_v10 = vpop.f32.mrf.mxu0  ;;  %v921_v11 = vpop.f32.mrf.mxu1 }
 0x15f   : > { %1720 = vpow2.f32 %v1509_v3  ;;  %v1510_v12 = vmul.f32 -1.442695, %v925_v46  ;;  %v1511_v25 = vmul.f32 -1.442695, %v927_v19  ;;  %v676_v46 = vld [vmem:[#allocation4] sm:$0xff] }
 0x160   : > { %v881_v14 = vpop.f32.mrf.mxu0  ;;  %v922_v13 = vpop.f32.mrf.mxu1 }
 0x161   : > { %1722 = vpow2.f32 %v1510_v12 }
 0x162   : > { %1724 = vpow2.f32 %v1511_v25 }
 0x16c   : > { %v1721_v16 = vpop.eup %1720 }
 0x16d   : > { %v931_v9 = vadd.f32 1.0, %v1721_v16 }
 0x16e   : > { %v1723_v21 = vpop.eup %1722 }
 0x16f   : > { %1726 = vrcp.f32 %v931_v9  ;;  %v937_v27 = vadd.f32 1.0, %v1723_v21  ;;  %v1725_v10 = vpop.eup %1724 }
 0x170   : > { %1728 = vtanh.f32 %v926_v23  ;;  %v947_v26 = vadd.f32 1.0, %v1725_v10 }
 0x171   : > { %1730 = vrcp.f32 %v937_v27 }
 0x172   : > { %1732 = vrcp.f32 %v947_v26 }
 0x17c   : > { %v1727_v3 = vpop.eup %1726 }
 0x17d   : > { %v1729_v14 = vpop.eup %1728 }
 0x17e   : > { %v1731_v13 = vpop.eup %1730  ;;  %v942_v22 = vmul.f32 %v1729_v14, %v1727_v3 }
 0x17f   : > { %v941_v24 = vmul.f32 %v1731_v13, %v676_v46  ;;  %v1733_v20 = vpop.eup %1732 }
 0x181   : > { %v2295_v18 = vadd.f32 %v942_v22, %v941_v24 }
 0x183   : > { %1734 = vtanh.f32 %v2295_v18 }
 0x190   : > { %v1735_v19 = vpop.eup %1734 }
 0x191   : > { %v951_v9 = vmul.f32 %v1735_v19, %v1733_v20 }
 0x193   : > { %952 = vst [vmem:[%s2123_s27] sm:$0xff] %v951_v9  ;;  %v958_v25 = vpack.c.bf16 %v951_v9, %v951_v9 }
 0x195   : > { %992 = vmatmul.mubr.bf16.vlgmr.msra.gmra.mxu0 %v958_v25  ;;  %1033 = vmatmul.mubr.bf16.vlgmr.msra.gmra.mxu1 %v958_v25 }
 0x196   : > { %1078 = vmatpush1.bf16.msra.mxu0 %v2134_v39  ;;  %1119 = vmatpush1.bf16.msra.mxu1 %v2136_v40 }
 0x197   : > { %1079 = vmatprep.subr.bf16.mxu0 %v2138_v41  ;;  %1120 = vmatprep.subr.bf16.mxu1 %v2142_v42 }
 0x198   : > { %1109 = vmatprep.mubr.bf16.mxu0 %v2467_v30  ;;  %1150 = vmatprep.mubr.bf16.mxu1 %v2467_v30 }
 0x19a   : > { %1080 = vmatpush1.bf16.msra.mxu0 %v2144_v43  ;;  %1121 = vmatpush1.bf16.msra.mxu1 %v2146_v44 }
 0x19b   : > { %1081 = vmatprep.subr.bf16.mxu0 %v2148_v45  ;;  %1122 = vmatprep.subr.bf16.mxu1 %v2156_v48 }
 0x19e   : > { %1082 = vmatpush1.bf16.msra.mxu0 %v2160_v49  ;;  %1123 = vmatpush1.bf16.msra.mxu1 %v2164_v51 }
 0x19f   : > { %1083 = vmatprep.subr.bf16.mxu0 %v2166_v52  ;;  %1124 = vmatprep.subr.bf16.mxu1 %v2170_v53 }
 0x1a2   : > { %1084 = vmatpush1.bf16.msra.mxu0 %v2174_v54  ;;  %1125 = vmatpush1.bf16.msra.mxu1 %v2176_v55 }
 0x1a3   : > { %1085 = vmatprep.subr.bf16.mxu0 %v2180_v56  ;;  %1126 = vmatprep.subr.bf16.mxu1 %v2182_v57 }
 0x1a6   : > { %1086 = vmatpush1.bf16.msra.mxu0 %v2188_v58  ;;  %1127 = vmatpush1.bf16.msra.mxu1 %v2190_v59 }
 0x1a7   : > { %1087 = vmatprep.subr.bf16.mxu0 %v2194_v60  ;;  %1128 = vmatprep.subr.bf16.mxu1 %v2196_v61 }
 0x1aa   : > { %1088 = vmatpush1.bf16.msra.mxu0 %v2200_v62  ;;  %1129 = vmatpush1.bf16.msra.mxu1 %v2202_v63 }
 0x1ab   : > { %1089 = vmatprep.subr.bf16.mxu0 %v2206_v0  ;;  %1130 = vmatprep.subr.bf16.mxu1 %v2208_v1 }
 0x1ae   : > { %1090 = vmatpush1.bf16.msra.mxu0 %v2212_v2  ;;  %1131 = vmatpush1.bf16.msra.mxu1 %v2214_v4 }
 0x1af   : > { %1091 = vmatprep.subr.bf16.mxu0 %v2218_v5  ;;  %1132 = vmatprep.subr.bf16.mxu1 %v2220_v6 }
 0x1b2   : > { %1092 = vmatpush1.bf16.msra.mxu0 %v2224_v7  ;;  %1133 = vmatpush1.bf16.msra.mxu1 %v2226_v8 }
 0x1b3   : > { %1195 = vmatprep.subr.bf16.mxu0 %v2130_v36  ;;  %1236 = vmatprep.subr.bf16.mxu1 %v2132_v37 }
 0x255   : > { %v993_v31 = vpop.f32.mrf.mxu0  ;;  %v1034_v34 = vpop.f32.mrf.mxu1 }
 0x256   : > { %v1041_v35 = vadd.f32 %v993_v31, %v2271_v28  ;;  %v1043_v37 = vadd.f32 %v1034_v34, %v2273_v29 }
 0x257   : > { %v995_v47 = vpop.f32.mrf.mxu0  ;;  %v1036_v50 = vpop.f32.mrf.mxu1 }
 0x258   : > { %v1512_v11 = vmul.f32 -1.442695, %v1041_v35  ;;  %v1042_v12 = vadd.f32 %v995_v47, %v2275_v32  ;;  %v1044_v36 = vadd.f32 %v1036_v50, %v2277_v33  ;;  %v2471_v47 = vld [vmem:[#allocation18_spill] sm:$0xff] }
 0x259   : > { %v997_v15 = vpop.f32.mrf.mxu0  ;;  %v1038_v17 = vpop.f32.mrf.mxu1 }
 0x25a   : > { %1736 = vpow2.f32 %v1512_v11  ;;  %v1513_v16 = vmul.f32 -1.442695, %v1042_v12  ;;  %v1514_v27 = vmul.f32 -1.442695, %v1044_v36  ;;  %v2472_v17 = vld [vmem:[#allocation20_spill] sm:$0xff] }
 0x25b   : > { %v998_v23 = vpop.f32.mrf.mxu0  ;;  %v1039_v21 = vpop.f32.mrf.mxu1 }
 0x25c   : > { %1738 = vpow2.f32 %v1513_v16 }
 0x25d   : > { %1740 = vtanh.f32 %v1043_v37 }
 0x25e   : > { %1742 = vpow2.f32 %v1514_v27 }
 0x267   : > { %v1737_v10 = vpop.eup %1736 }
 0x268   : > { %v1048_v3 = vadd.f32 1.0, %v1737_v10  ;;  %v2473_v10 = vld [vmem:[#allocation21_spill] sm:$0xff] }
 0x269   : > { %v1739_v28 = vpop.eup %1738 }
 0x26a   : > { %1744 = vrcp.f32 %v1048_v3  ;;  %v1054_v32 = vadd.f32 1.0, %v1739_v28  ;;  %v1741_v46 = vpop.eup %1740  ;;  %v2474_v28 = vld [vmem:[#allocation19_spill] sm:$0xff] }
 0x26b   : > { %v1743_v14 = vpop.eup %1742 }
 0x26c   : > { %1746 = vrcp.f32 %v1054_v32  ;;  %v1064_v24 = vadd.f32 1.0, %v1743_v14 }
 0x26e   : > { %1748 = vrcp.f32 %v1064_v24 }
 0x277   : > { %v1745_v13 = vpop.eup %1744 }
 0x278   : > { %v1059_v26 = vmul.f32 %v1745_v13, %v1741_v46 }
 0x279   : > { %v1747_v22 = vpop.eup %1746 }
 0x27a   : > { %v1058_v33 = vmul.f32 %v1747_v22, %v2295_v18 }
 0x27b   : > { %v1749_v29 = vpop.eup %1748 }
 0x27c   : > { %v2338_v20 = vadd.f32 %v1059_v26, %v1058_v33 }
 0x27e   : > { %1750 = vtanh.f32 %v2338_v20 }
 0x28b   : > { %v1751_v19 = vpop.eup %1750 }
 0x28c   : > { %v1068_v9 = vmul.f32 %v1751_v19, %v1749_v29 }
 0x28e   : > { %1515 = vst [vmem:[%s2123_s27 + $0x8] sm:$0xff] %v1068_v9  ;;  %v1076_v25 = vpack.c.bf16 %v1068_v9, %v1068_v9 }
 0x290   : > { %1110 = vmatmul.mubr.bf16.vlgmr.msra.gmra.mxu0 %v1076_v25  ;;  %1151 = vmatmul.mubr.bf16.vlgmr.msra.gmra.mxu1 %v1076_v25 }
 0x291   : > { %1196 = vmatpush1.bf16.msra.mxu0 %v2134_v39  ;;  %1237 = vmatpush1.bf16.msra.mxu1 %v2136_v40 }
 0x292   : > { %1197 = vmatprep.subr.bf16.mxu0 %v2138_v41  ;;  %1238 = vmatprep.subr.bf16.mxu1 %v2142_v42 }
 0x293   : > { %1227 = vmatprep.mubr.bf16.mxu0 %v2467_v30  ;;  %1268 = vmatprep.mubr.bf16.mxu1 %v2467_v30 }
 0x295   : > { %1198 = vmatpush1.bf16.msra.mxu0 %v2144_v43  ;;  %1239 = vmatpush1.bf16.msra.mxu1 %v2146_v44 }
 0x296   : > { %1199 = vmatprep.subr.bf16.mxu0 %v2148_v45  ;;  %1240 = vmatprep.subr.bf16.mxu1 %v2156_v48  ;;  %v2468_v45 = vld [vmem:[#allocation16_spill] sm:$0xff] }
 0x299   : > { %1200 = vmatpush1.bf16.msra.mxu0 %v2160_v49  ;;  %1241 = vmatpush1.bf16.msra.mxu1 %v2164_v51 }
 0x29a   : > { %1201 = vmatprep.subr.bf16.mxu0 %v2166_v52  ;;  %1242 = vmatprep.subr.bf16.mxu1 %v2170_v53 }
 0x29d   : > { %1202 = vmatpush1.bf16.msra.mxu0 %v2174_v54  ;;  %1243 = vmatpush1.bf16.msra.mxu1 %v2176_v55  ;;  %v2469_v55 = vld [vmem:[#allocation17_spill] sm:$0xff] }
 0x29e   : > { %1203 = vmatprep.subr.bf16.mxu0 %v2180_v56  ;;  %1244 = vmatprep.subr.bf16.mxu1 %v2182_v57  ;;  %v2470_v57 = vld [vmem:[#allocation15_spill] sm:$0xff] }
 0x2a1   : > { %1204 = vmatpush1.bf16.msra.mxu0 %v2188_v58  ;;  %1245 = vmatpush1.bf16.msra.mxu1 %v2190_v59 }
 0x2a2   : > { %1205 = vmatprep.subr.bf16.mxu0 %v2194_v60  ;;  %1246 = vmatprep.subr.bf16.mxu1 %v2196_v61 }
 0x2a5   : > { %1206 = vmatpush1.bf16.msra.mxu0 %v2200_v62  ;;  %1247 = vmatpush1.bf16.msra.mxu1 %v2202_v63 }
 0x2a6   : > { %1207 = vmatprep.subr.bf16.mxu0 %v2206_v0  ;;  %1248 = vmatprep.subr.bf16.mxu1 %v2208_v1 }
 0x2a9   : > { %1208 = vmatpush1.bf16.msra.mxu0 %v2212_v2  ;;  %1249 = vmatpush1.bf16.msra.mxu1 %v2214_v4 }
 0x2aa   : > { %1209 = vmatprep.subr.bf16.mxu0 %v2218_v5  ;;  %1250 = vmatprep.subr.bf16.mxu1 %v2220_v6 }
 0x2ad   : > { %1210 = vmatpush1.bf16.msra.mxu0 %v2224_v7  ;;  %1251 = vmatpush1.bf16.msra.mxu1 %v2226_v8 }
 0x350   : > { %v1111_v39 = vpop.f32.mrf.mxu0  ;;  %v1152_v40 = vpop.f32.mrf.mxu1 }
 0x351   : > { %v1159_v41 = vadd.f32 %v1111_v39, %v2279_v38  ;;  %v1161_v58 = vadd.f32 %v1152_v40, %v2470_v57 }
 0x352   : > { %v1113_v42 = vpop.f32.mrf.mxu0  ;;  %v1154_v43 = vpop.f32.mrf.mxu1 }
 0x353   : > { %v1516_v44 = vmul.f32 -1.442695, %v1159_v41  ;;  %v1160_v48 = vadd.f32 %v1113_v42, %v2468_v45  ;;  %v1162_v56 = vadd.f32 %v1154_v43, %v2469_v55 }
 0x354   : > { %v1115_v49 = vpop.f32.mrf.mxu0  ;;  %v1156_v51 = vpop.f32.mrf.mxu1 }
 0x355   : > { %1752 = vpow2.f32 %v1516_v44  ;;  %v1517_v52 = vmul.f32 -1.442695, %v1160_v48  ;;  %v1518_v59 = vmul.f32 -1.442695, %v1162_v56 }
 0x356   : > { %v1116_v53 = vpop.f32.mrf.mxu0  ;;  %v1157_v54 = vpop.f32.mrf.mxu1 }
 0x357   : > { %1754 = vpow2.f32 %v1517_v52 }
 0x358   : > { %1756 = vtanh.f32 %v1161_v58 }
 0x359   : > { %1758 = vpow2.f32 %v1518_v59 }
 0x362   : > { %v1753_v60 = vpop.eup %1752 }
 0x363   : > { %v1166_v61 = vadd.f32 1.0, %v1753_v60 }
 0x364   : > { %v1755_v62 = vpop.eup %1754 }
 0x365   : > { %1760 = vrcp.f32 %v1166_v61  ;;  %v1172_v63 = vadd.f32 1.0, %v1755_v62  ;;  %v1757_v0 = vpop.eup %1756 }
 0x366   : > { %v1759_v1 = vpop.eup %1758 }
 0x367   : > { %1762 = vrcp.f32 %v1172_v63  ;;  %v1182_v6 = vadd.f32 1.0, %v1759_v1 }
 0x369   : > { %1764 = vrcp.f32 %v1182_v6 }
 0x372   : > { %v1761_v2 = vpop.eup %1760 }
 0x373   : > { %v1177_v4 = vmul.f32 %v1761_v2, %v1757_v0 }
 0x374   : > { %v1763_v5 = vpop.eup %1762 }
 0x375   : > { %v1176_v7 = vmul.f32 %v1763_v5, %v2338_v20 }
 0x376   : > { %v1765_v38 = vpop.eup %1764 }
 0x377   : > { %v1178_v8 = vadd.f32 %v1177_v4, %v1176_v7 }
 0x379   : > { %1766 = vtanh.f32 %v1178_v8 }
 0x386   : > { %v1767_v18 = vpop.eup %1766 }
 0x387   : > { %v1186_v30 = vmul.f32 %v1767_v18, %v1765_v38 }
 0x389   : > { %1519 = vst [vmem:[%s2123_s27 + $0x10] sm:$0xff] %v1186_v30  ;;  %v1194_v31 = vpack.c.bf16 %v1186_v30, %v1186_v30 }
 0x38b   : > { %1228 = vmatmul.mubr.bf16.vlgmr.msra.gmra.mxu0 %v1194_v31  ;;  %1269 = vmatmul.mubr.bf16.vlgmr.msra.gmra.mxu1 %v1194_v31 }
 0x44b   : > { %v1229_v34 = vpop.f32.mrf.mxu0  ;;  %v1270_v35 = vpop.f32.mrf.mxu1 }
 0x44c   : > { %v1277_v50 = vadd.f32 %v1229_v34, %v2471_v47  ;;  %v1279_v32 = vadd.f32 %v1270_v35, %v2474_v28 }
 0x44d   : > { %v1231_v11 = vpop.f32.mrf.mxu0  ;;  %v1272_v12 = vpop.f32.mrf.mxu1 }
 0x44e   : > { %v1520_v15 = vmul.f32 -1.442695, %v1277_v50  ;;  %v1278_v16 = vadd.f32 %v1231_v11, %v2472_v17  ;;  %v1280_v3 = vadd.f32 %v1272_v12, %v2473_v10 }
 0x44f   : > { %v1233_v23 = vpop.f32.mrf.mxu0  ;;  %v1274_v21 = vpop.f32.mrf.mxu1 }
 0x450   : > { %1768 = vpow2.f32 %v1520_v15  ;;  %v1521_v36 = vmul.f32 -1.442695, %v1278_v16  ;;  %v1522_v46 = vmul.f32 -1.442695, %v1280_v3 }
 0x451   : > { %v1234_v37 = vpop.f32.mrf.mxu0  ;;  %v1275_v27 = vpop.f32.mrf.mxu1 }
 0x452   : > { %1770 = vpow2.f32 %v1521_v36 }
 0x453   : > { %1772 = vtanh.f32 %v1279_v32 }
 0x454   : > { %1774 = vpow2.f32 %v1522_v46 }
 0x45d   : > { %v1769_v14 = vpop.eup %1768 }
 0x45e   : > { %v1284_v13 = vadd.f32 1.0, %v1769_v14 }
 0x45f   : > { %v1771_v26 = vpop.eup %1770 }
 0x460   : > { %1776 = vrcp.f32 %v1284_v13  ;;  %v1290_v22 = vadd.f32 1.0, %v1771_v26  ;;  %v1773_v24 = vpop.eup %1772 }
 0x461   : > { %v1775_v33 = vpop.eup %1774 }
 0x462   : > { %1778 = vrcp.f32 %v1290_v22  ;;  %v1300_v9 = vadd.f32 1.0, %v1775_v33 }
 0x464   : > { %1780 = vrcp.f32 %v1300_v9 }
 0x46d   : > { %v1777_v20 = vpop.eup %1776 }
 0x46e   : > { %v1295_v29 = vmul.f32 %v1777_v20, %v1773_v24 }
 0x46f   : > { %v1779_v19 = vpop.eup %1778 }
 0x470   : > { %v1294_v25 = vmul.f32 %v1779_v19, %v1178_v8 }
 0x471   : > { %v1781_v40 = vpop.eup %1780 }
 0x472   : > { %v1296_v39 = vadd.f32 %v1295_v29, %v1294_v25 }
 0x474   : > { %1782 = vtanh.f32 %v1296_v39  ;;  %1308 = vst [vmem:[#allocation4] sm:$0xff] %v1296_v39 }
 0x481   : > { %v1783_v41 = vpop.eup %1782 }
 0x482   : > { %v1304_v42 = vmul.f32 %v1783_v41, %v1781_v40 }
 0x484   : > { %1307 = vst [vmem:[#allocation3] sm:$0xff] %v1304_v42  ;;  %1523 = vst [vmem:[%s2123_s27 + $0x18] sm:$0xff] %v1304_v42 }
 0x485   : > { %1877 = shalt.err (!%p1874_p10)
}
 0x486   : > { %s1878_s9 = scalar_lea.hbm %s2389_s22, 512  ;;  %s1882_s27 = scalar_lea.hbm %s2444_s4, 1024 }
 0x487   : > { %p1879_p1 = scmp.ne.s32.totalorder %s2389_s22, %s1878_s9  ;;  %p1883_p12 = scmp.lt.s32.totalorder %s2389_s22, %s2444_s4 }
 0x488   : > { %p1884_p3 = scmp.lt.s32.totalorder %s1882_s27, %s1878_s9 }
 0x489   : > { %p1880_p4 = pnand %p1879_p1, %p2082_p7 }
 0x48a   : > { %p1885_p8 = por %p1884_p3, %p1883_p12 }
 0x48b   : > { %p1881_p6 = pneg %p1880_p4 }
 0x48d   : > { %p1886_p9 = pnand %p1885_p8, %p1881_p6 }
 0x48f   : > { %1889 = shalt.err (!%p1886_p9)
}
 0x490   : > { %s1960_s10 = smov 128   ;;  %s1961_s24 = smov 8  }
 0x491   : > { %1543 = dma.vmem_to_hbm [thread:$0]  (%p2082_p7), %s2391_s12, 512, %s2389_s22, %s1310_s29, %s1960_s10, %s1960_s10, %s1961_s24  }
 0x492 PF: > { %s1339_s13 = sand.u32 1, %s1928_s15   ;;  %p2475_p11 = scmp.ne.s32.totalorder %s2453_s26, 0 }
 0x493   : > { %p2476_p2 = scmp.ge.s32.totalorder %s1948_s20, 2  ;;  %s1340_s6 = scalar_lea.sflag [#allocation7], %s1339_s13 }
 0x495   : > { %p1557_p13 = pnand %p2476_p2, %p2475_p11 }
 0x497   : > { %p1558_p0 = pneg %p1557_p13 }
 0x499   : > { %1923 = dma.done.wait (%p1558_p0), %s1340_s6, 512  }
 0x49a   : > { %1925 = vsyncadd (%p1558_p0), %s1340_s6, 4294966784  ;;  %s21_s20 = sadd.s32 1, %s1948_s20   ;;  %s2477_s15 = smov %s1932_s16 }
 0x49b   : > { %p18_p5 = scmp.ge.s32.totalorder %s21_s20, 4   ;;  %s2478_s16 = smov %s1936_s17 }
 0x49c   : > { %s2479_s17 = smov %s2091_s7  ;;  %s2480_s18 = smov %s1944_s19 }
 0x49d   : > { %s2481_s19 = smov %s2483_s21  ;;  %20 = sbr.rel (!%p18_p5) target bundleno = 7 (0x7), region = 99 }
 0x4a2   :  { %1345 = vsyncpa [#allocation6], 1 }
 0x4a3   :  { %1347 = vsyncpa [#allocation6 + $0x1], 1 }
 0x4a4   :  { %1348 = vsyncpa [#allocation9], 1 }
 0x4a5   :  { %1349 = vsyncpa [#allocation7], 1 }
 0x4a6   :  { %1351 = vsyncpa [#allocation7 + $0x1], 1 }

</bundles_post_ra>
